<compile_context>
chip_gen: v5e
topology: v5e:2x2
jax: 0.10.0
libtpu: 0.0.40
codegen_flags: <defaults>
</compile_context>

<pallas_src>
import jax
import jax.numpy as jnp
from jax.experimental import pallas as pl
from jax.experimental.pallas import tpu as pltpu

IN_FEATURES = 1000
K_PAD = 1024                # 8 clean 128-lane chunks for the MXU K loop
PARTICLE_N = 512            # N in the PyTorch module (self.particle_num)
CUT_OFF = 10.0              # script-level cut_off = 10
ACTIVATION = "Tanh"         # script-level activation_type = 'Tanh'
MAX_TILE_B = 1024           # batch rows per grid step (VMEM-budgeted for v5e/v6e/v7x)


def _round_up(x, m):
    return (x + m - 1) // m * m


def _net_kernel(x_ref, w1t_ref, b1_ref, w2_ref, o_ref, xpad_ref):
    # Cast the f32 x tile to bf16 and stage it in a K-aligned (1024-lane) VMEM
    # scratch tile.  The 24 padding lanes are zeroed every step (the scratch
    # persists across grid steps and across megacore shards, so a step-0-only
    # init would be unsafe under "parallel" semantics).
    xpad_ref[:, :IN_FEATURES] = x_ref[...].astype(jnp.bfloat16)
    xpad_ref[:, IN_FEATURES:] = jnp.zeros(
        (xpad_ref.shape[0], K_PAD - IN_FEATURES), jnp.bfloat16)

    # fc1 on the MXU: bf16 x bf16 inputs, f32 accumulation.
    h = jnp.dot(xpad_ref[...], w1t_ref[...], preferred_element_type=jnp.float32)
    h = h + b1_ref[...]                       # [TB, N] + [1, N] broadcast (f32)

    # activation (EUP)
    if ACTIVATION == "ReLU":
        h = jnp.maximum(h, 0.0)
    elif ACTIVATION == "Sigmoid":
        h = jax.nn.sigmoid(h)
    else:  # Tanh
        h = jnp.tanh(h)

    # fc2 (weights pre-clipped and pre-scaled by 1/N outside) as a
    # VPU multiply + lane reduction instead of a 1-column MXU matvec.
    # TODO(synk): output column is lane-sparse ([TB,1]); a transposed (x^T)
    # formulation would make stores lane-dense but would reintroduce a wrapper
    # transpose pass over x, which costs more than it saves here.
    o_ref[...] = jnp.sum(h * w2_ref[...], axis=-1, keepdims=True)


def prepare_params(w1, b1, w2):
    """One-time parameter prep (do NOT call per forward).

    w1: [N, 1000], b1: [N], w2: [1, N]
    -> (w1t [1024, N] bf16, b1 [1, N] f32, w2_eff [1, N] f32)
    """
    n = w1.shape[0]
    w1t = jnp.zeros((K_PAD, n), jnp.float32).at[:IN_FEATURES, :].set(w1.T)
    w1t = w1t.astype(jnp.bfloat16)
    b1_2d = b1.reshape(1, n).astype(jnp.float32)
    # torch.clamp(fc2.weight, -cut_off, cut_off) then / particle_num, folded here.
    w2_eff = (jnp.clip(w2, -CUT_OFF, CUT_OFF) / n).reshape(1, n).astype(jnp.float32)
    return w1t, b1_2d, w2_eff


@jax.jit
def net_forward(x, w1t, b1_2d, w2_eff):
    """x: [B, 1000] f32 -> [B] (squeezed, like torch)."""
    B, K = x.shape
    n = w1t.shape[1]
    assert K == IN_FEATURES

    # Batch tiling:
    #  * B <= MAX_TILE_B: single exact block (block dim == full array dim, no padding).
    #  * B  > MAX_TILE_B: balance the tile so the last (partial) block is nearly
    #    full -> no up-to-one-whole-tile of dead MXU work / dead DMA.
    if B <= MAX_TILE_B:
        tile_b = B
    else:
        num_tiles = pl.cdiv(B, MAX_TILE_B)
        tile_b = _round_up(pl.cdiv(B, num_tiles), 8)
    grid = (pl.cdiv(B, tile_b),)

    out = pl.pallas_call(
        _net_kernel,
        out_shape=jax.ShapeDtypeStruct((B, 1), jnp.float32),
        grid=grid,
        in_specs=[
            # x streamed/double-buffered over the batch, f32, unpadded
            # (last block dim == full array dim satisfies the (8,128) rule).
            pl.BlockSpec((tile_b, IN_FEATURES), lambda i: (i, 0)),
            pl.BlockSpec((K_PAD, n), lambda i: (0, 0)),   # W1^T: resident
            pl.BlockSpec((1, n), lambda i: (0, 0)),       # b1: resident
            pl.BlockSpec((1, n), lambda i: (0, 0)),       # w2_eff: resident
        ],
        out_specs=pl.BlockSpec((tile_b, 1), lambda i: (i, 0)),
        scratch_shapes=[pltpu.VMEM((tile_b, K_PAD), jnp.bfloat16)],  # K-aligned bf16 x tile
        compiler_params=pltpu.CompilerParams(
            dimension_semantics=("parallel",)),           # megacore over batch
    )(x, w1t, b1_2d, w2_eff)

    # torch's x.squeeze(): [B,1] -> [B] (or scalar if B == 1)
    return jnp.squeeze(out)


def init_params(key, n=PARTICLE_N, in_features=IN_FEATURES):
    # nn.init.normal_(..., mean=0, std=0.1) for fc1.weight, fc1.bias, fc2.weight
    k1, k2, k3 = jax.random.split(key, 3)
    w1 = 0.1 * jax.random.normal(k1, (n, in_features), dtype=jnp.float32)
    b1 = 0.1 * jax.random.normal(k2, (n,), dtype=jnp.float32)
    w2 = 0.1 * jax.random.normal(k3, (1, n), dtype=jnp.float32)
    return w1, b1, w2


if __name__ == "__main__":
    key = jax.random.PRNGKey(0)
    kx, kp = jax.random.split(key)

    B = 8
    x = jax.random.normal(kx, (B, IN_FEATURES), dtype=jnp.float32)
    w1, b1, w2 = init_params(kp)

    # One-time weight prep (transpose/pad/bf16-cast/clip/scale), then forward.
    w1t, b1_2d, w2_eff = prepare_params(w1, b1, w2)
    y = net_forward(x, w1t, b1_2d, w2_eff)
    jax.block_until_ready(y)

    # Pure-JAX f32 reference of the same math (kernel uses bf16 fc1 inputs,
    # f32 accumulation -> looser tolerance).
    ref = (jnp.tanh(x @ w1.T + b1) @ jnp.clip(w2, -CUT_OFF, CUT_OFF).T
           / PARTICLE_N).squeeze(-1)
    assert y.shape == (B,), y.shape
    assert jnp.allclose(y, ref, atol=2e-3, rtol=2e-2), (
        "max abs err", float(jnp.max(jnp.abs(y - ref))))

    print("KERNEL_OK")
</pallas_src>

<mosaic_0001>
module attributes {stable_mosaic.version = 11 : i64} {
  func.func @_net_kernel(%arg0: i32, %arg1: memref<8x1000xf32, #tpu.memory_space<vmem>>, %arg2: memref<1024x512xbf16, #tpu.memory_space<vmem>>, %arg3: memref<1x512xf32, #tpu.memory_space<vmem>>, %arg4: memref<1x512xf32, #tpu.memory_space<vmem>>, %arg5: memref<8x1xf32, #tpu.memory_space<vmem>>, %arg6: memref<8x1024xbf16, #tpu.memory_space<vmem>>) attributes {dimension_semantics = [#tpu.dimension_semantics<parallel>], iteration_bounds = array<i64: 1>, scalar_prefetch = 0 : i64, scratch_operands = 1 : i64, tpu.core_type = #tpu.core_type<tc>, window_params = [{transform_indices = @transform_0, window_bounds = array<i64: 8, 1000>}, {pipeline_mode = #tpu.pipeline_mode<synchronous>, transform_indices = @transform_1, window_bounds = array<i64: 1024, 512>}, {pipeline_mode = #tpu.pipeline_mode<synchronous>, transform_indices = @transform_2, window_bounds = array<i64: 1, 512>}, {pipeline_mode = #tpu.pipeline_mode<synchronous>, transform_indices = @transform_3, window_bounds = array<i64: 1, 512>}, {transform_indices = @transform_4, window_bounds = array<i64: 8, 1>}]} {
    %c0 = arith.constant 0 : index
    %c0_0 = arith.constant 0 : index
    %0 = vector.load %arg1[%c0, %c0_0] : memref<8x1000xf32, #tpu.memory_space<vmem>>, vector<8x1000xf32>
    %1 = arith.truncf %0 : vector<8x1000xf32> to vector<8x1000xbf16>
    %c0_1 = arith.constant 0 : index
    %c0_2 = arith.constant 0 : index
    %2 = vector.load %arg6[%c0_1, %c0_2] : memref<8x1024xbf16, #tpu.memory_space<vmem>>, vector<8x1000xbf16>
    tpu.vector_store %arg6[%c0_1, %c0_2], %1 {strides = array<i32>} : memref<8x1024xbf16, #tpu.memory_space<vmem>>, vector<8x1000xbf16>,
    %cst = arith.constant 0.000000e+00 : bf16
    %3 = vector.broadcast %cst : bf16 to vector<8x24xbf16>
    %c0_3 = arith.constant 0 : index
    %c1000 = arith.constant 1000 : index
    %4 = vector.load %arg6[%c0_3, %c1000] : memref<8x1024xbf16, #tpu.memory_space<vmem>>, vector<8x24xbf16>
    tpu.vector_store %arg6[%c0_3, %c1000], %3 {strides = array<i32>} : memref<8x1024xbf16, #tpu.memory_space<vmem>>, vector<8x24xbf16>,
    %c0_4 = arith.constant 0 : index
    %c0_5 = arith.constant 0 : index
    %5 = vector.load %arg6[%c0_4, %c0_5] : memref<8x1024xbf16, #tpu.memory_space<vmem>>, vector<8x1024xbf16>
    %c0_6 = arith.constant 0 : index
    %c0_7 = arith.constant 0 : index
    %6 = vector.load %arg2[%c0_6, %c0_7] : memref<1024x512xbf16, #tpu.memory_space<vmem>>, vector<1024x512xbf16>
    %cst_8 = arith.constant dense<0.000000e+00> : vector<8x512xf32>
    %7 = tpu.matmul %5, %6, %cst_8 {dimension_numbers = #tpu.dot_dimension_numbers<[1], [0], [0], [1], [0, 0, 1, 1], [], []>} : vector<8x1024xbf16>, vector<1024x512xbf16>, vector<8x512xf32> -> vector<8x512xf32>
    %c0_9 = arith.constant 0 : index
    %c0_10 = arith.constant 0 : index
    %8 = vector.load %arg3[%c0_9, %c0_10] : memref<1x512xf32, #tpu.memory_space<vmem>>, vector<1x512xf32>
    %9 = vector.broadcast %8 : vector<1x512xf32> to vector<8x512xf32>
    %10 = arith.addf %7, %9 : vector<8x512xf32>
    %11 = math.tanh %10 : vector<8x512xf32>
    %c0_11 = arith.constant 0 : index
    %c0_12 = arith.constant 0 : index
    %12 = vector.load %arg4[%c0_11, %c0_12] : memref<1x512xf32, #tpu.memory_space<vmem>>, vector<1x512xf32>
    %13 = vector.broadcast %12 : vector<1x512xf32> to vector<8x512xf32>
    %14 = arith.mulf %11, %13 : vector<8x512xf32>
    %cst_13 = arith.constant dense<0.000000e+00> : vector<8xf32>
    %15 = vector.multi_reduction <add>, %14, %cst_13 [1] : vector<8x512xf32> to vector<8xf32>
    %16 = vector.shape_cast %15 : vector<8xf32> to vector<8x1xf32>
    %c0_14 = arith.constant 0 : index
    %c0_15 = arith.constant 0 : index
    %17 = vector.load %arg5[%c0_14, %c0_15] : memref<8x1xf32, #tpu.memory_space<vmem>>, vector<8x1xf32>
    tpu.vector_store %arg5[%c0_14, %c0_15], %16 {strides = array<i32>} : memref<8x1xf32, #tpu.memory_space<vmem>>, vector<8x1xf32>,
    return
  }
  func.func @transform_0(%arg0: i32) -> (i32, i32) {
    %c0_i32 = arith.constant 0 : i32
    %c0_i32_0 = arith.constant 0 : i32
    return %arg0, %c0_i32 : i32, i32
  }
  func.func @transform_1(%arg0: i32) -> (i32, i32) {
    %c0_i32 = arith.constant 0 : i32
    %c0_i32_0 = arith.constant 0 : i32
    %c0_i32_1 = arith.constant 0 : i32
    return %c0_i32, %c0_i32_0 : i32, i32
  }
  func.func @transform_2(%arg0: i32) -> (i32, i32) {
    %c0_i32 = arith.constant 0 : i32
    %c0_i32_0 = arith.constant 0 : i32
    %c0_i32_1 = arith.constant 0 : i32
    return %c0_i32, %c0_i32_0 : i32, i32
  }
  func.func @transform_3(%arg0: i32) -> (i32, i32) {
    %c0_i32 = arith.constant 0 : i32
    %c0_i32_0 = arith.constant 0 : i32
    %c0_i32_1 = arith.constant 0 : i32
    return %c0_i32, %c0_i32_0 : i32, i32
  }
  func.func @transform_4(%arg0: i32) -> (i32, i32) {
    %c0_i32 = arith.constant 0 : i32
    %c0_i32_0 = arith.constant 0 : i32
    return %arg0, %c0_i32 : i32, i32
  }
}

</mosaic_0001>

<bundles_post_ra>
// kernel: net_forward.1
= control target key start
LH: loop header
LB: loop body
LE: loop exit
PB: predicated region body
PF: predicated region fallthrough
CT: control target
= control target key end

     0   :  { %9 = vsyncpa [#allocation4], 0  ;;  %s3635_s0 = inlined_call_operand.hbm [shape: f32[8,1000], index: 0, kind: input, shape index: {}]   ;;  %s3636_s1 = inlined_call_operand.hbm [shape: bf16[1024,512], index: 1, kind: input, shape index: {}]   ;;  %s3637_s2 = inlined_call_operand.hbm [shape: f32[1,512], index: 2, kind: input, shape index: {}]   ;;  %s3638_s3 = inlined_call_operand.hbm [shape: f32[1,512], index: 3, kind: input, shape index: {}]   ;;  %s3639_s4 = inlined_call_operand.vmem [shape: f32[8,1], index: 4, kind: output, shape index: {}]  }
   0x1   :  { %10 = vsyncpa [#allocation6], 0  ;;  %s27_s17 = sshll.u32 %s3636_s1, 4  ;;  %s28_s17 = int_to_ptr.hbm [resolvable:$true] %s27_s17 }
   0x2   :  { %11 = vsyncpa [#allocation9], 0  ;;  %s3519_s18 = smov [#allocation5]   ;;  %s17_s22 = sshll.u32 %s3635_s0, 4  ;;  %s18_s22 = int_to_ptr.hbm [resolvable:$true] %s17_s22 }
   0x3   :  { %s29_s19 = sshll.u32 %s3519_s18, 4  ;;  %s3520_s23 = smov 256   ;;  %s30_s19 = int_to_ptr.vmem [resolvable:$true] %s29_s19 }
   0x4   :  { %s3521_s24 = smov 16   ;;  %s3522_s25 = smov [#allocation3]  }
   0x5   :  { %35 = dma.hbm_to_vmem [thread:$0]  %s28_s17, 32768, %s30_s19, [#allocation6], %s3520_s23, %s3520_s23, %s3521_s24  }
   0x6   :  { %s19_s26 = sshll.u32 %s3522_s25, 4  ;;  %s41_s29 = sshll.u32 %s3637_s2, 4  ;;  %s20_s26 = int_to_ptr.vmem [resolvable:$true] %s19_s26  ;;  %s42_s29 = int_to_ptr.hbm [resolvable:$true] %s41_s29 }
   0x7   :  { %22 = dma.hbm_to_vmem [thread:$0]  %s18_s22, 1024, %s20_s26, [#allocation4]  }
   0x8   :  { %s52_s5 = sshll.u32 %s3638_s3, 4  ;;  %s3523_s6 = smov [#allocation7]   ;;  %s53_s5 = int_to_ptr.hbm [resolvable:$true] %s52_s5 }
   0x9   :  { %s43_s7 = sshll.u32 %s3523_s6, 4  ;;  %s3524_s0 = smov [#allocation8]   ;;  %s44_s7 = int_to_ptr.vmem [resolvable:$true] %s43_s7 }
   0xa   :  { %46 = dma.hbm_to_vmem [thread:$0]  %s42_s29, 64, %s44_s7, [#allocation6]  }
   0xb   :  { %s54_s8 = sshll.u32 %s3524_s0, 4  ;;  %s55_s8 = int_to_ptr.vmem [resolvable:$true] %s54_s8 }
   0xc   :  { %57 = dma.hbm_to_vmem [thread:$0]  %s53_s5, 64, %s55_s8, [#allocation9]  }
   0xd   :  { %3513 = dma.done.wait [#allocation4], 1024  }
   0xe   :  { %3514 = vsyncadd [#allocation4], 4294966272 }
   0xf   :  { %3515 = dma.done.wait [#allocation6], 32832  }
  0x10   :  { %3516 = vsyncadd [#allocation6], 4294934464 }
  0x11   :  { %3517 = dma.done.wait [#allocation9], 64  }
  0x12   :  { %3518 = vsyncadd [#allocation9], 4294967232  ;;  %v2236_v0 = vld [vmem:[#allocation5 + $0xe0] sm:$0xf]  ;;  %v3176_v1 = vld [vmem:[#allocation5 + $0xec] sm:$0xf0] }
  0x13   :  { %v2364_v2 = vld [vmem:[#allocation5 + $0x1e0] sm:$0xf]  ;;  %v2237_v3 = vor.u32 %v3176_v1, %v2236_v0  ;;  %v3208_v4 = vld [vmem:[#allocation5 + $0x1ec] sm:$0xf0]  ;;  %vm90_vm0 = vcmask 1043456   ;;  %vm91_vm1 = vcmask 850948  }
  0x14   :  { %v2492_v5 = vld [vmem:[#allocation5 + $0x2e0] sm:$0xf]  ;;  %v3240_v6 = vld [vmem:[#allocation5 + $0x2ec] sm:$0xf0]  ;;  %v2365_v7 = vor.u32 %v3208_v4, %v2364_v2  ;;  %vm94_vm2 = vcmask 1044288   ;;  %vm92_vm3 = vmor %vm91_vm1, %vm90_vm0  ;;  %vm2113_vm4 = vcmask 7168  }
  0x15   :  { %v2493_v8 = vor.u32 %v3240_v6, %v2492_v5  ;;  %v2620_v9 = vld [vmem:[#allocation5 + $0x3e0] sm:$0xf]  ;;  %v3272_v10 = vld [vmem:[#allocation5 + $0x3ec] sm:$0xf0]  ;;  %1674 = vmatpush.bf16.msra.mxu0 %v2237_v3 }
  0x16   :  { %v2220_v11 = vld [vmem:[#allocation5 + $0xc0] sm:$0xf]  ;;  %v2621_v12 = vor.u32 %v3272_v10, %v2620_v9  ;;  %v3172_v13 = vld [vmem:[#allocation5 + $0xcc] sm:$0xf0]  ;;  %1687 = vmatpush.bf16.msra.mxu1 %v2365_v7 }
  0x17   :  { %v2348_v14 = vld [vmem:[#allocation5 + $0x1c0] sm:$0xf]  ;;  %v3204_v15 = vld [vmem:[#allocation5 + $0x1cc] sm:$0xf0]  ;;  %1700 = vmatpush.bf16.msra.mxu2 %v2493_v8  ;;  %v2221_v16 = vor.u32 %v3172_v13, %v2220_v11 }
  0x18   :  { %v2349_v17 = vor.u32 %v3204_v15, %v2348_v14  ;;  %v2476_v18 = vld [vmem:[#allocation5 + $0x2c0] sm:$0xf]  ;;  %v3236_v19 = vld [vmem:[#allocation5 + $0x2cc] sm:$0xf0]  ;;  %1713 = vmatpush.bf16.msra.mxu3 %v2621_v12 }
  0x19   :  { %v2604_v20 = vld [vmem:[#allocation5 + $0x3c0] sm:$0xf]  ;;  %v2477_v21 = vor.u32 %v3236_v19, %v2476_v18  ;;  %v3268_v22 = vld [vmem:[#allocation5 + $0x3cc] sm:$0xf0]  ;;  %1675 = vmatpush.bf16.msra.mxu0 %v2221_v16 }
  0x1a   :  { %v2204_v23 = vld [vmem:[#allocation5 + $0xa0] sm:$0xf]  ;;  %v3168_v24 = vld [vmem:[#allocation5 + $0xac] sm:$0xf0]  ;;  %v2605_v25 = vor.u32 %v3268_v22, %v2604_v20  ;;  %1688 = vmatpush.bf16.msra.mxu1 %v2349_v17 }
  0x1b   :  { %v2332_v26 = vld [vmem:[#allocation5 + $0x1a0] sm:$0xf]  ;;  %v3200_v27 = vld [vmem:[#allocation5 + $0x1ac] sm:$0xf0]  ;;  %v2205_v29 = vor.u32 %v3168_v24, %v2204_v23  ;;  %1701 = vmatpush.bf16.msra.mxu2 %v2477_v21 }
  0x1c   :  { %v2460_v28 = vld [vmem:[#allocation5 + $0x2a0] sm:$0xf]  ;;  %v3232_v30 = vld [vmem:[#allocation5 + $0x2ac] sm:$0xf0]  ;;  %v2333_v33 = vor.u32 %v3200_v27, %v2332_v26  ;;  %1714 = vmatpush.bf16.msra.mxu3 %v2605_v25 }
  0x1d   :  { %v2588_v31 = vld [vmem:[#allocation5 + $0x3a0] sm:$0xf]  ;;  %v3264_v32 = vld [vmem:[#allocation5 + $0x3ac] sm:$0xf0]  ;;  %v2461_v34 = vor.u32 %v3232_v30, %v2460_v28  ;;  %1676 = vmatpush.bf16.msra.mxu0 %v2205_v29 }
  0x1e   :  { %v2188_v35 = vld [vmem:[#allocation5 + $0x80] sm:$0xf]  ;;  %v3164_v36 = vld [vmem:[#allocation5 + $0x8c] sm:$0xf0]  ;;  %v2589_v38 = vor.u32 %v3264_v32, %v2588_v31  ;;  %1689 = vmatpush.bf16.msra.mxu1 %v2333_v33 }
  0x1f   :  { %v2316_v37 = vld [vmem:[#allocation5 + $0x180] sm:$0xf]  ;;  %v3196_v39 = vld [vmem:[#allocation5 + $0x18c] sm:$0xf0]  ;;  %v2189_v44 = vor.u32 %v3164_v36, %v2188_v35  ;;  %1702 = vmatpush.bf16.msra.mxu2 %v2461_v34 }
  0x20   :  { %v2444_v40 = vld [vmem:[#allocation5 + $0x280] sm:$0xf]  ;;  %v3228_v41 = vld [vmem:[#allocation5 + $0x28c] sm:$0xf0]  ;;  %v2317_v45 = vor.u32 %v3196_v39, %v2316_v37  ;;  %1715 = vmatpush.bf16.msra.mxu3 %v2589_v38 }
  0x21   :  { %v2572_v42 = vld [vmem:[#allocation5 + $0x380] sm:$0xf]  ;;  %v3260_v43 = vld [vmem:[#allocation5 + $0x38c] sm:$0xf0]  ;;  %v2445_v46 = vor.u32 %v3228_v41, %v2444_v40  ;;  %1677 = vmatpush.bf16.msra.mxu0 %v2189_v44 }
  0x22   :  { %v2172_v47 = vld [vmem:[#allocation5 + $0x60] sm:$0xf]  ;;  %v3160_v48 = vld [vmem:[#allocation5 + $0x6c] sm:$0xf0]  ;;  %v2573_v50 = vor.u32 %v3260_v43, %v2572_v42  ;;  %1690 = vmatpush.bf16.msra.mxu1 %v2317_v45 }
  0x23   :  { %v2300_v49 = vld [vmem:[#allocation5 + $0x160] sm:$0xf]  ;;  %v3192_v51 = vld [vmem:[#allocation5 + $0x16c] sm:$0xf0]  ;;  %v2173_v56 = vor.u32 %v3160_v48, %v2172_v47  ;;  %1703 = vmatpush.bf16.msra.mxu2 %v2445_v46 }
  0x24   :  { %v2428_v52 = vld [vmem:[#allocation5 + $0x260] sm:$0xf]  ;;  %v3224_v53 = vld [vmem:[#allocation5 + $0x26c] sm:$0xf0]  ;;  %v2301_v57 = vor.u32 %v3192_v51, %v2300_v49  ;;  %1716 = vmatpush.bf16.msra.mxu3 %v2573_v50 }
  0x25   :  { %v2556_v54 = vld [vmem:[#allocation5 + $0x360] sm:$0xf]  ;;  %v3256_v55 = vld [vmem:[#allocation5 + $0x36c] sm:$0xf0]  ;;  %v2429_v58 = vor.u32 %v3224_v53, %v2428_v52  ;;  %1678 = vmatpush.bf16.msra.mxu0 %v2173_v56 }
  0x26   :  { %v2156_v59 = vld [vmem:[#allocation5 + $0x40] sm:$0xf]  ;;  %v3156_v60 = vld [vmem:[#allocation5 + $0x4c] sm:$0xf0]  ;;  %v2557_v62 = vor.u32 %v3256_v55, %v2556_v54  ;;  %1691 = vmatpush.bf16.msra.mxu1 %v2301_v57 }
  0x27   :  { %v2284_v61 = vld [vmem:[#allocation5 + $0x140] sm:$0xf]  ;;  %v3188_v63 = vld [vmem:[#allocation5 + $0x14c] sm:$0xf0]  ;;  %v2157_v4 = vor.u32 %v3156_v60, %v2156_v59  ;;  %1704 = vmatpush.bf16.msra.mxu2 %v2429_v58 }
  0x28   :  { %v2412_v0 = vld [vmem:[#allocation5 + $0x240] sm:$0xf]  ;;  %v3220_v1 = vld [vmem:[#allocation5 + $0x24c] sm:$0xf0]  ;;  %v2285_v5 = vor.u32 %v3188_v63, %v2284_v61  ;;  %1717 = vmatpush.bf16.msra.mxu3 %v2557_v62 }
  0x29   :  { %v2540_v2 = vld [vmem:[#allocation5 + $0x340] sm:$0xf]  ;;  %v3252_v3 = vld [vmem:[#allocation5 + $0x34c] sm:$0xf0]  ;;  %v2413_v6 = vor.u32 %v3220_v1, %v2412_v0  ;;  %1679 = vmatpush.bf16.msra.mxu0 %v2157_v4 }
  0x2a   :  { %v2140_v7 = vld [vmem:[#allocation5 + $0x20] sm:$0xf]  ;;  %v3152_v8 = vld [vmem:[#allocation5 + $0x2c] sm:$0xf0]  ;;  %v2541_v10 = vor.u32 %v3252_v3, %v2540_v2  ;;  %1692 = vmatpush.bf16.msra.mxu1 %v2285_v5  ;;  %v78_v5 = vld [vmem:[#allocation3 + $0x18] sm:$0xff] }
  0x2b   :  { %v2268_v9 = vld [vmem:[#allocation5 + $0x120] sm:$0xf]  ;;  %v3184_v11 = vld [vmem:[#allocation5 + $0x12c] sm:$0xf0]  ;;  %v2141_v16 = vor.u32 %v3152_v8, %v2140_v7  ;;  %1705 = vmatpush.bf16.msra.mxu2 %v2413_v6 }
  0x2c   :  { %v2396_v12 = vld [vmem:[#allocation5 + $0x220] sm:$0xf]  ;;  %v3216_v13 = vld [vmem:[#allocation5 + $0x22c] sm:$0xf0]  ;;  %v2269_v19 = vor.u32 %v3184_v11, %v2268_v9  ;;  %1718 = vmatpush.bf16.msra.mxu3 %v2541_v10  ;;  %v76_v11 = vld [vmem:[#allocation3 + $0x8] sm:$0xff] }
  0x2d   :  { %v2524_v14 = vld [vmem:[#allocation5 + $0x320] sm:$0xf]  ;;  %v3248_v15 = vld [vmem:[#allocation5 + $0x32c] sm:$0xf0]  ;;  %v2397_v20 = vor.u32 %v3216_v13, %v2396_v12  ;;  %1680 = vmatpush.bf16.msra.mxu0 %v2141_v16 }
  0x2e   :  { %v2124_v17 = vld [vmem:[#allocation5] sm:$0xf]  ;;  %v3148_v18 = vld [vmem:[#allocation5 + $0xc] sm:$0xf0]  ;;  %v2525_v24 = vor.u32 %v3248_v15, %v2524_v14  ;;  %1693 = vmatpush.bf16.msra.mxu1 %v2269_v19 }
  0x2f   :  { %v2252_v21 = vld [vmem:[#allocation5 + $0x100] sm:$0xf]  ;;  %v3180_v22 = vld [vmem:[#allocation5 + $0x10c] sm:$0xf0]  ;;  %v2125_v31 = vor.u32 %v3148_v18, %v2124_v17  ;;  %1706 = vmatpush.bf16.msra.mxu2 %v2397_v20 }
  0x30   :  { %v2380_v23 = vld [vmem:[#allocation5 + $0x200] sm:$0xf]  ;;  %v3212_v25 = vld [vmem:[#allocation5 + $0x20c] sm:$0xf0]  ;;  %v2253_v35 = vor.u32 %v3180_v22, %v2252_v21  ;;  %1719 = vmatpush.bf16.msra.mxu3 %v2525_v24 }
  0x31   :  { %v2508_v26 = vld [vmem:[#allocation5 + $0x300] sm:$0xf]  ;;  %v3244_v27 = vld [vmem:[#allocation5 + $0x30c] sm:$0xf0]  ;;  %v2381_v36 = vor.u32 %v3212_v25, %v2380_v23  ;;  %1681 = vmatpush.bf16.msra.mxu0 %v2125_v31 }
  0x32   :  { %v2748_v28 = vld [vmem:[#allocation5 + $0x4e0] sm:$0xf]  ;;  %v3304_v29 = vld [vmem:[#allocation5 + $0x4ec] sm:$0xf0]  ;;  %v2509_v39 = vor.u32 %v3244_v27, %v2508_v26  ;;  %1694 = vmatpush.bf16.msra.mxu1 %v2253_v35 }
  0x33   :  { %v2876_v30 = vld [vmem:[#allocation5 + $0x5e0] sm:$0xf]  ;;  %v3336_v32 = vld [vmem:[#allocation5 + $0x5ec] sm:$0xf0]  ;;  %v2749_v40 = vor.u32 %v3304_v29, %v2748_v28  ;;  %1707 = vmatpush.bf16.msra.mxu2 %v2381_v36 }
  0x34   :  { %v3004_v33 = vld [vmem:[#allocation5 + $0x6e0] sm:$0xf]  ;;  %v3368_v34 = vld [vmem:[#allocation5 + $0x6ec] sm:$0xf0]  ;;  %v2877_v41 = vor.u32 %v3336_v32, %v2876_v30  ;;  %1720 = vmatpush.bf16.msra.mxu3 %v2509_v39  ;;  %v82_v39 = vld [vmem:[#allocation3 + $0x38] sm:$0xff] }
  0x35   :  { %v3132_v37 = vld [vmem:[#allocation5 + $0x7e0] sm:$0xf]  ;;  %v3400_v38 = vld [vmem:[#allocation5 + $0x7ec] sm:$0xf0]  ;;  %v3005_v42 = vor.u32 %v3368_v34, %v3004_v33  ;;  %1726 = vmatpush.bf16.msrb.mxu0 %v2749_v40 }
  0x36   :  { %v2732_v43 = vld [vmem:[#allocation5 + $0x4c0] sm:$0xf]  ;;  %v3300_v44 = vld [vmem:[#allocation5 + $0x4cc] sm:$0xf0]  ;;  %v3133_v46 = vor.u32 %v3400_v38, %v3132_v37  ;;  %1739 = vmatpush.bf16.msrb.mxu1 %v2877_v41 }
  0x37   :  { %v2860_v45 = vld [vmem:[#allocation5 + $0x5c0] sm:$0xf]  ;;  %v3332_v47 = vld [vmem:[#allocation5 + $0x5cc] sm:$0xf0]  ;;  %v2733_v52 = vor.u32 %v3300_v44, %v2732_v43  ;;  %1752 = vmatpush.bf16.msrb.mxu2 %v3005_v42 }
  0x38   :  { %v2988_v48 = vld [vmem:[#allocation5 + $0x6c0] sm:$0xf]  ;;  %v3364_v49 = vld [vmem:[#allocation5 + $0x6cc] sm:$0xf0]  ;;  %v2861_v54 = vor.u32 %v3332_v47, %v2860_v45  ;;  %1765 = vmatpush.bf16.msrb.mxu3 %v3133_v46 }
  0x39   :  { %v3116_v50 = vld [vmem:[#allocation5 + $0x7c0] sm:$0xf]  ;;  %v3396_v51 = vld [vmem:[#allocation5 + $0x7cc] sm:$0xf0]  ;;  %v2989_v55 = vor.u32 %v3364_v49, %v2988_v48  ;;  %1727 = vmatpush.bf16.msrb.mxu0 %v2733_v52 }
  0x3a   :  { %v2716_v53 = vld [vmem:[#allocation5 + $0x4a0] sm:$0xf]  ;;  %v3296_v56 = vld [vmem:[#allocation5 + $0x4ac] sm:$0xf0]  ;;  %v3117_v59 = vor.u32 %v3396_v51, %v3116_v50  ;;  %1740 = vmatpush.bf16.msrb.mxu1 %v2861_v54 }
  0x3b   :  { %v2844_v57 = vld [vmem:[#allocation5 + $0x5a0] sm:$0xf]  ;;  %v3328_v58 = vld [vmem:[#allocation5 + $0x5ac] sm:$0xf0]  ;;  %v2717_v2 = vor.u32 %v3296_v56, %v2716_v53  ;;  %1753 = vmatpush.bf16.msrb.mxu2 %v2989_v55 }
  0x3c   :  { %v2972_v60 = vld [vmem:[#allocation5 + $0x6a0] sm:$0xf]  ;;  %v3360_v61 = vld [vmem:[#allocation5 + $0x6ac] sm:$0xf0]  ;;  %v2845_v6 = vor.u32 %v3328_v58, %v2844_v57  ;;  %1766 = vmatpush.bf16.msrb.mxu3 %v3117_v59 }
  0x3d   :  { %v3100_v62 = vld [vmem:[#allocation5 + $0x7a0] sm:$0xf]  ;;  %v3392_v63 = vld [vmem:[#allocation5 + $0x7ac] sm:$0xf0]  ;;  %v2973_v7 = vor.u32 %v3360_v61, %v2972_v60  ;;  %1728 = vmatpush.bf16.msrb.mxu0 %v2717_v2 }
  0x3e   :  { %v2700_v0 = vld [vmem:[#allocation5 + $0x480] sm:$0xf]  ;;  %v3292_v1 = vld [vmem:[#allocation5 + $0x48c] sm:$0xf0]  ;;  %v3101_v12 = vor.u32 %v3392_v63, %v3100_v62  ;;  %1741 = vmatpush.bf16.msrb.mxu1 %v2845_v6 }
  0x3f   :  { %v2828_v3 = vld [vmem:[#allocation5 + $0x580] sm:$0xf]  ;;  %v77_v4 = vld [vmem:[#allocation3 + $0x10] sm:$0xff]  ;;  %v2701_v20 = vor.u32 %v3292_v1, %v2700_v0  ;;  %1754 = vmatpush.bf16.msrb.mxu2 %v2973_v7  ;;  %v80_v7 = vld [vmem:[#allocation3 + $0x28] sm:$0xff] }
  0x40   :  { %v3324_v8 = vld [vmem:[#allocation5 + $0x58c] sm:$0xf0]  ;;  %v84_v9 = vpack.c.bf16 %v78_v5, %v77_v4  ;;  %v75_v10 = vld [vmem:[#allocation3] sm:$0xff]  ;;  %1767 = vmatpush.bf16.msrb.mxu3 %v3101_v12 }
  0x41   :  { %v2956_v13 = vld [vmem:[#allocation5 + $0x680] sm:$0xf]  ;;  %v3356_v14 = vld [vmem:[#allocation5 + $0x68c] sm:$0xf0]  ;;  %v83_v15 = vpack.c.bf16 %v76_v11, %v75_v10  ;;  %v2829_v21 = vor.u32 %v3324_v8, %v2828_v3  ;;  %1729 = vmatpush.bf16.msrb.mxu0 %v2701_v20  ;;  %v3525_v3 = vmov 0  }
  0x42   :  { %v3084_v16 = vld [vmem:[#allocation5 + $0x780] sm:$0xf]  ;;  %v3388_v17 = vld [vmem:[#allocation5 + $0x78c] sm:$0xf0]  ;;  %v372_v18 = vunpack.c.l.b16 %v84_v9  ;;  %v373_v19 = vunpack.c.h.b16 %v84_v9  ;;  %v2957_v25 = vor.u32 %v3356_v14, %v2956_v13 }
  0x43   :  { %v2684_v22 = vld [vmem:[#allocation5 + $0x460] sm:$0xf]  ;;  %v370_v23 = vunpack.c.l.b16 %v83_v15  ;;  %v371_v24 = vunpack.c.h.b16 %v83_v15  ;;  %v3288_v26 = vld [vmem:[#allocation5 + $0x46c] sm:$0xf0]  ;;  %v3085_v31 = vor.u32 %v3388_v17, %v3084_v16  ;;  %1742 = vmatpush.bf16.msrb.mxu1 %v2829_v21  ;;  %v3174_v17 = vld [vmem:[#allocation5 + $0xe4] sm:$0xf] }
  0x44   :  { %v2812_v27 = vld [vmem:[#allocation5 + $0x560] sm:$0xf]  ;;  %v3320_v28 = vld [vmem:[#allocation5 + $0x56c] sm:$0xf0]  ;;  %v3563_v29 = vpack.c.b16 %v372_v18, %v372_v18  ;;  %v3565_v30 = vpack.c.b16 %v373_v19, %v373_v19  ;;  %v2685_v40 = vor.u32 %v3288_v26, %v2684_v22  ;;  %1755 = vmatpush.bf16.msrb.mxu2 %v2957_v25  ;;  %v2238_v18 = vld [vmem:[#allocation5 + $0xf0] sm:$0xf0] }
  0x45   :  { %v2940_v32 = vld [vmem:[#allocation5 + $0x660] sm:$0xf]  ;;  %v3352_v33 = vld [vmem:[#allocation5 + $0x66c] sm:$0xf0]  ;;  %v3567_v35 = vpack.c.b16 %v370_v23, %v370_v23  ;;  %v3569_v36 = vpack.c.b16 %v371_v24, %v371_v24  ;;  %v2813_v42 = vor.u32 %v3320_v28, %v2812_v27  ;;  %1768 = vmatpush.bf16.msrb.mxu3 %v3085_v31  ;;  %v3206_v19 = vld [vmem:[#allocation5 + $0x1e4] sm:$0xf] }
  0x46   :  { %v3068_v34 = vld [vmem:[#allocation5 + $0x760] sm:$0xf]  ;;  %v3384_v37 = vld [vmem:[#allocation5 + $0x76c] sm:$0xf0]  ;;  %1708 = vmatmul.bf16.vlgmr.msra.gmra.mxu2 %v3563_v29  ;;  %1721 = vmatmul.bf16.vlgmr.msra.gmra.mxu3 %v3565_v30  ;;  %v2941_v43 = vor.u32 %v3352_v33, %v2940_v32  ;;  %v2366_v21 = vld [vmem:[#allocation5 + $0x1f0] sm:$0xf0]  ;;  %v2241_v32 = vor.u32 %v3174_v17, %v2238_v18 }
  0x47   :  { %v81_v38 = vld [vmem:[#allocation3 + $0x30] sm:$0xff]  ;;  %v2668_v41 = vld [vmem:[#allocation5 + $0x440] sm:$0xf]  ;;  %1695 = vmatmul.bf16.vlgmr.msra.gmra.mxu1 %v3569_v36  ;;  %v3069_v47 = vor.u32 %v3384_v37, %v3068_v34  ;;  %1682 = vmatmul.bf16.vlgmr.msra.gmra.mxu0 %v3567_v35  ;;  %v3238_v22 = vld [vmem:[#allocation5 + $0x2e4] sm:$0xf]  ;;  %v2369_v37 = vor.u32 %v3206_v19, %v2366_v21 }
  0x48   :  { %v3284_v44 = vld [vmem:[#allocation5 + $0x44c] sm:$0xf0]  ;;  %v2796_v45 = vld [vmem:[#allocation5 + $0x540] sm:$0xf]  ;;  %v86_v50 = vpack.c.bf16 %v82_v39, %v81_v38  ;;  %1730 = vmatpush.bf16.msrb.mxu0 %v2685_v40  ;;  %1743 = vmatpush.bf16.msrb.mxu1 %v2813_v42  ;;  %v2494_v23 = vld [vmem:[#allocation5 + $0x2f0] sm:$0xf0] }
  0x49   :  { %v3316_v46 = vld [vmem:[#allocation5 + $0x54c] sm:$0xf0]  ;;  %v2924_v48 = vld [vmem:[#allocation5 + $0x640] sm:$0xf]  ;;  %v2669_v54 = vor.u32 %v3284_v44, %v2668_v41  ;;  %1756 = vmatpush.bf16.msrb.mxu2 %v2941_v43  ;;  %1769 = vmatpush.bf16.msrb.mxu3 %v3069_v47  ;;  %v3270_v26 = vld [vmem:[#allocation5 + $0x3e4] sm:$0xf]  ;;  %v2497_v38 = vor.u32 %v3238_v22, %v2494_v23 }
  0x4a   :  { %v3348_v49 = vld [vmem:[#allocation5 + $0x64c] sm:$0xf0]  ;;  %v3052_v51 = vld [vmem:[#allocation5 + $0x740] sm:$0xf]  ;;  %v2797_v57 = vor.u32 %v3316_v46, %v2796_v45  ;;  %93 = vst.msk [vmem:[#allocation2 + $0x18] sm:$0xff] %vm92_vm3, %v86_v50 }
  0x4b   :  { %v3380_v52 = vld [vmem:[#allocation5 + $0x74c] sm:$0xf0]  ;;  %v2652_v53 = vld [vmem:[#allocation5 + $0x420] sm:$0xf]  ;;  %v2925_v58 = vor.u32 %v3348_v49, %v2924_v48  ;;  %95 = vst.msk [vmem:[#allocation2 + $0x1c] sm:$0xf] %vm94_vm2, %v3525_v3 }
  0x4c   :  { %v3280_v55 = vld [vmem:[#allocation5 + $0x42c] sm:$0xf0]  ;;  %v2780_v56 = vld [vmem:[#allocation5 + $0x520] sm:$0xf]  ;;  %v3053_v61 = vor.u32 %v3380_v52, %v3052_v51  ;;  %1731 = vmatpush.bf16.msrb.mxu0 %v2669_v54  ;;  %1744 = vmatpush.bf16.msrb.mxu1 %v2797_v57  ;;  %v2622_v27 = vld [vmem:[#allocation5 + $0x3f0] sm:$0xf0] }
  0x4d   :  { %v3312_v59 = vld [vmem:[#allocation5 + $0x52c] sm:$0xf0]  ;;  %v2908_v60 = vld [vmem:[#allocation5 + $0x620] sm:$0xf]  ;;  %v2653_v4 = vor.u32 %v3280_v55, %v2652_v53  ;;  %1757 = vmatpush.bf16.msrb.mxu2 %v2925_v58  ;;  %v3170_v39 = vld [vmem:[#allocation5 + $0xc4] sm:$0xf]  ;;  %v2625_v44 = vor.u32 %v3270_v26, %v2622_v27 }
  0x4e   :  { %v3344_v62 = vld [vmem:[#allocation5 + $0x62c] sm:$0xf0]  ;;  %v3036_v63 = vld [vmem:[#allocation5 + $0x720] sm:$0xf]  ;;  %v2781_v8 = vor.u32 %v3312_v59, %v2780_v56  ;;  %1770 = vmatpush.bf16.msrb.mxu3 %v3053_v61  ;;  %v2222_v40 = vld [vmem:[#allocation5 + $0xd0] sm:$0xf0] }
  0x4f   :  { %v79_v0 = vld [vmem:[#allocation3 + $0x20] sm:$0xff]  ;;  %v3376_v1 = vld [vmem:[#allocation5 + $0x72c] sm:$0xf0]  ;;  %v2909_v9 = vor.u32 %v3344_v62, %v2908_v60  ;;  %v2350_v45 = vld [vmem:[#allocation5 + $0x1d0] sm:$0xf0]  ;;  %v2225_v53 = vor.u32 %v3170_v39, %v2222_v40 }
  0x50   :  { %v2636_v2 = vld [vmem:[#allocation5 + $0x400] sm:$0xf]  ;;  %v3276_v5 = vld [vmem:[#allocation5 + $0x40c] sm:$0xf0]  ;;  %v85_v13 = vpack.c.bf16 %v80_v7, %v79_v0  ;;  %v3037_v14 = vor.u32 %v3376_v1, %v3036_v63  ;;  %1732 = vmatpush.bf16.msrb.mxu0 %v2653_v4  ;;  %1745 = vmatpush.bf16.msrb.mxu1 %v2781_v8  ;;  %v3202_v41 = vld [vmem:[#allocation5 + $0x1c4] sm:$0xf] }
  0x51   :  { %v2764_v6 = vld [vmem:[#allocation5 + $0x500] sm:$0xf]  ;;  %v3308_v10 = vld [vmem:[#allocation5 + $0x50c] sm:$0xf0]  ;;  %v2637_v20 = vor.u32 %v3276_v5, %v2636_v2  ;;  %1758 = vmatpush.bf16.msrb.mxu2 %v2909_v9  ;;  %v3234_v46 = vld [vmem:[#allocation5 + $0x2c4] sm:$0xf]  ;;  %v2353_v55 = vor.u32 %v3202_v41, %v2350_v45 }
  0x52   :  { %v2892_v11 = vld [vmem:[#allocation5 + $0x600] sm:$0xf]  ;;  %v3340_v12 = vld [vmem:[#allocation5 + $0x60c] sm:$0xf0]  ;;  %v2765_v24 = vor.u32 %v3308_v10, %v2764_v6  ;;  %v374_v28 = vunpack.c.l.b16 %v85_v13  ;;  %1771 = vmatpush.bf16.msrb.mxu3 %v3037_v14  ;;  %v99_v33 = vld [vmem:[#allocation2 + $0x18] sm:$0xff]  ;;  %v375_v34 = vunpack.c.h.b16 %v85_v13 }
  0x53   :  { %v3020_v15 = vld [vmem:[#allocation5 + $0x700] sm:$0xf]  ;;  %v3372_v16 = vld [vmem:[#allocation5 + $0x70c] sm:$0xf0]  ;;  %v2893_v25 = vor.u32 %v3340_v12, %v2892_v11  ;;  %v376_v42 = vunpack.c.l.b16 %v99_v33  ;;  %v377_v43 = vunpack.c.h.b16 %v99_v33  ;;  %v2478_v47 = vld [vmem:[#allocation5 + $0x2d0] sm:$0xf0] }
  0x54   :  { %v3021_v31 = vor.u32 %v3372_v16, %v3020_v15  ;;  %1733 = vmatpush.bf16.msrb.mxu0 %v2637_v20  ;;  %1746 = vmatpush.bf16.msrb.mxu1 %v2765_v24  ;;  %v3266_v48 = vld [vmem:[#allocation5 + $0x3c4] sm:$0xf]  ;;  %v2606_v49 = vld [vmem:[#allocation5 + $0x3d0] sm:$0xf0]  ;;  %v3580_v51 = vpack.c.b16 %v374_v28, %v374_v28  ;;  %v3584_v54 = vpack.c.b16 %v375_v34, %v375_v34 }
  0x55   :  { %1759 = vmatpush.bf16.msrb.mxu2 %v2893_v25  ;;  %v3578_v50 = vpack.c.b16 %v376_v42, %v376_v42  ;;  %v3582_v52 = vpack.c.b16 %v377_v43, %v377_v43  ;;  %v2481_v56 = vor.u32 %v3234_v46, %v2478_v47  ;;  %v3166_v57 = vld [vmem:[#allocation5 + $0xa4] sm:$0xf]  ;;  %v2206_v58 = vld [vmem:[#allocation5 + $0xb0] sm:$0xf0]  ;;  %v2609_v60 = vor.u32 %v3266_v48, %v2606_v49 }
  0x56   :  { %1772 = vmatpush.bf16.msrb.mxu3 %v3021_v31  ;;  %v3198_v59 = vld [vmem:[#allocation5 + $0x1a4] sm:$0xf]  ;;  %v2334_v61 = vld [vmem:[#allocation5 + $0x1b0] sm:$0xf0]  ;;  %v2209_v2 = vor.u32 %v3166_v57, %v2206_v58 }
  0x57   :  { %v3230_v62 = vld [vmem:[#allocation5 + $0x2a4] sm:$0xf]  ;;  %v2462_v63 = vld [vmem:[#allocation5 + $0x2b0] sm:$0xf0]  ;;  %1734 = vmatmul.bf16.vlgmr.msrb.gmra.mxu0 %v3580_v51  ;;  %1747 = vmatmul.bf16.vlgmr.msrb.gmra.mxu1 %v3584_v54  ;;  %v2337_v3 = vor.u32 %v3198_v59, %v2334_v61 }
  0x58   :  { %1778 = vmatpush.bf16.msra.mxu0 %v2241_v32  ;;  %1791 = vmatpush.bf16.msra.mxu1 %v2369_v37  ;;  %v3262_v0 = vld [vmem:[#allocation5 + $0x3a4] sm:$0xf]  ;;  %v2590_v1 = vld [vmem:[#allocation5 + $0x3b0] sm:$0xf0]  ;;  %v2465_v4 = vor.u32 %v3230_v62, %v2462_v63 }
  0x59   :  { %1804 = vmatpush.bf16.msra.mxu2 %v2497_v38  ;;  %1773 = vmatmul.bf16.vlgmr.msrb.gmra.mxu3 %v3582_v52  ;;  %v3162_v5 = vld [vmem:[#allocation5 + $0x84] sm:$0xf]  ;;  %v2190_v6 = vld [vmem:[#allocation5 + $0x90] sm:$0xf0]  ;;  %v2593_v8 = vor.u32 %v3262_v0, %v2590_v1 }
  0x5a   :  { %1817 = vmatpush.bf16.msra.mxu3 %v2625_v44  ;;  %1760 = vmatmul.bf16.vlgmr.msrb.gmra.mxu2 %v3578_v50  ;;  %v3194_v7 = vld [vmem:[#allocation5 + $0x184] sm:$0xf]  ;;  %v2318_v9 = vld [vmem:[#allocation5 + $0x190] sm:$0xf0]  ;;  %v2193_v14 = vor.u32 %v3162_v5, %v2190_v6 }
  0x5b   :  { %v3226_v10 = vld [vmem:[#allocation5 + $0x284] sm:$0xf]  ;;  %v2446_v11 = vld [vmem:[#allocation5 + $0x290] sm:$0xf0]  ;;  %v2321_v15 = vor.u32 %v3194_v7, %v2318_v9 }
  0x5c   :  { %1779 = vmatpush.bf16.msra.mxu0 %v2225_v53  ;;  %1792 = vmatpush.bf16.msra.mxu1 %v2353_v55  ;;  %v3258_v12 = vld [vmem:[#allocation5 + $0x384] sm:$0xf]  ;;  %v2574_v13 = vld [vmem:[#allocation5 + $0x390] sm:$0xf0]  ;;  %v2449_v16 = vor.u32 %v3226_v10, %v2446_v11 }
  0x5d   :  { %1805 = vmatpush.bf16.msra.mxu2 %v2481_v56  ;;  %v3158_v17 = vld [vmem:[#allocation5 + $0x64] sm:$0xf]  ;;  %v2174_v18 = vld [vmem:[#allocation5 + $0x70] sm:$0xf0]  ;;  %v2577_v20 = vor.u32 %v3258_v12, %v2574_v13 }
  0x5e   :  { %1818 = vmatpush.bf16.msra.mxu3 %v2609_v60  ;;  %v3190_v19 = vld [vmem:[#allocation5 + $0x164] sm:$0xf]  ;;  %v2302_v21 = vld [vmem:[#allocation5 + $0x170] sm:$0xf0]  ;;  %v2177_v26 = vor.u32 %v3158_v17, %v2174_v18 }
  0x5f   :  { %v3222_v22 = vld [vmem:[#allocation5 + $0x264] sm:$0xf]  ;;  %v2430_v23 = vld [vmem:[#allocation5 + $0x270] sm:$0xf0]  ;;  %v2305_v27 = vor.u32 %v3190_v19, %v2302_v21 }
  0x60   :  { %1780 = vmatpush.bf16.msra.mxu0 %v2209_v2  ;;  %1793 = vmatpush.bf16.msra.mxu1 %v2337_v3  ;;  %v3254_v24 = vld [vmem:[#allocation5 + $0x364] sm:$0xf]  ;;  %v2558_v25 = vld [vmem:[#allocation5 + $0x370] sm:$0xf0]  ;;  %v2433_v28 = vor.u32 %v3222_v22, %v2430_v23 }
  0x61   :  { %1806 = vmatpush.bf16.msra.mxu2 %v2465_v4  ;;  %v3154_v31 = vld [vmem:[#allocation5 + $0x44] sm:$0xf]  ;;  %v2158_v32 = vld [vmem:[#allocation5 + $0x50] sm:$0xf0]  ;;  %v2561_v34 = vor.u32 %v3254_v24, %v2558_v25 }
  0x62   :  { %1819 = vmatpush.bf16.msra.mxu3 %v2593_v8  ;;  %v3186_v33 = vld [vmem:[#allocation5 + $0x144] sm:$0xf]  ;;  %v2286_v37 = vld [vmem:[#allocation5 + $0x150] sm:$0xf0]  ;;  %v2161_v42 = vor.u32 %v3154_v31, %v2158_v32 }
  0x63   :  { %v3218_v38 = vld [vmem:[#allocation5 + $0x244] sm:$0xf]  ;;  %v2414_v39 = vld [vmem:[#allocation5 + $0x250] sm:$0xf0]  ;;  %v2289_v43 = vor.u32 %v3186_v33, %v2286_v37 }
  0x64   :  { %1781 = vmatpush.bf16.msra.mxu0 %v2193_v14  ;;  %1794 = vmatpush.bf16.msra.mxu1 %v2321_v15  ;;  %v3250_v40 = vld [vmem:[#allocation5 + $0x344] sm:$0xf]  ;;  %v2542_v41 = vld [vmem:[#allocation5 + $0x350] sm:$0xf0]  ;;  %v2417_v44 = vor.u32 %v3218_v38, %v2414_v39 }
  0x65   :  { %1807 = vmatpush.bf16.msra.mxu2 %v2449_v16  ;;  %v3150_v45 = vld [vmem:[#allocation5 + $0x24] sm:$0xf]  ;;  %v2142_v46 = vld [vmem:[#allocation5 + $0x30] sm:$0xf0]  ;;  %v2545_v48 = vor.u32 %v3250_v40, %v2542_v41 }
  0x66   :  { %1820 = vmatpush.bf16.msra.mxu3 %v2577_v20  ;;  %v3182_v47 = vld [vmem:[#allocation5 + $0x124] sm:$0xf]  ;;  %v2270_v49 = vld [vmem:[#allocation5 + $0x130] sm:$0xf0]  ;;  %v2145_v58 = vor.u32 %v3150_v45, %v2142_v46 }
  0x67   :  { %v3214_v53 = vld [vmem:[#allocation5 + $0x224] sm:$0xf]  ;;  %v2398_v55 = vld [vmem:[#allocation5 + $0x230] sm:$0xf0]  ;;  %v2273_v61 = vor.u32 %v3182_v47, %v2270_v49 }
  0x68   :  { %1782 = vmatpush.bf16.msra.mxu0 %v2177_v26  ;;  %1795 = vmatpush.bf16.msra.mxu1 %v2305_v27  ;;  %v3246_v56 = vld [vmem:[#allocation5 + $0x324] sm:$0xf]  ;;  %v2526_v57 = vld [vmem:[#allocation5 + $0x330] sm:$0xf0]  ;;  %v2401_v62 = vor.u32 %v3214_v53, %v2398_v55 }
  0x69   :  { %1808 = vmatpush.bf16.msra.mxu2 %v2433_v28  ;;  %v3146_v59 = vld [vmem:[#allocation5 + $0x4] sm:$0xf]  ;;  %v2126_v60 = vld [vmem:[#allocation5 + $0x10] sm:$0xf0]  ;;  %v2529_v2 = vor.u32 %v3246_v56, %v2526_v57 }
  0x6a   :  { %1821 = vmatpush.bf16.msra.mxu3 %v2561_v34  ;;  %v3178_v63 = vld [vmem:[#allocation5 + $0x104] sm:$0xf]  ;;  %v2254_v0 = vld [vmem:[#allocation5 + $0x110] sm:$0xf0]  ;;  %v2129_v9 = vor.u32 %v3146_v59, %v2126_v60 }
  0x6b   :  { %v3210_v1 = vld [vmem:[#allocation5 + $0x204] sm:$0xf]  ;;  %v2382_v3 = vld [vmem:[#allocation5 + $0x210] sm:$0xf0]  ;;  %v2257_v13 = vor.u32 %v3178_v63, %v2254_v0 }
  0x6c   :  { %1783 = vmatpush.bf16.msra.mxu0 %v2161_v42  ;;  %1796 = vmatpush.bf16.msra.mxu1 %v2289_v43  ;;  %v3242_v4 = vld [vmem:[#allocation5 + $0x304] sm:$0xf]  ;;  %v2510_v5 = vld [vmem:[#allocation5 + $0x310] sm:$0xf0]  ;;  %v2385_v14 = vor.u32 %v3210_v1, %v2382_v3 }
  0x6d   :  { %1809 = vmatpush.bf16.msra.mxu2 %v2417_v44  ;;  %v3302_v6 = vld [vmem:[#allocation5 + $0x4e4] sm:$0xf]  ;;  %v2750_v7 = vld [vmem:[#allocation5 + $0x4f0] sm:$0xf0]  ;;  %v2513_v17 = vor.u32 %v3242_v4, %v2510_v5 }
  0x6e   :  { %1822 = vmatpush.bf16.msra.mxu3 %v2545_v48  ;;  %v3334_v8 = vld [vmem:[#allocation5 + $0x5e4] sm:$0xf]  ;;  %v2878_v10 = vld [vmem:[#allocation5 + $0x5f0] sm:$0xf0]  ;;  %v2753_v18 = vor.u32 %v3302_v6, %v2750_v7 }
  0x6f   :  { %v3366_v11 = vld [vmem:[#allocation5 + $0x6e4] sm:$0xf]  ;;  %v3006_v12 = vld [vmem:[#allocation5 + $0x6f0] sm:$0xf0]  ;;  %v2881_v19 = vor.u32 %v3334_v8, %v2878_v10 }
  0x70   :  { %1784 = vmatpush.bf16.msra.mxu0 %v2145_v58  ;;  %1797 = vmatpush.bf16.msra.mxu1 %v2273_v61  ;;  %v3398_v15 = vld [vmem:[#allocation5 + $0x7e4] sm:$0xf]  ;;  %v3134_v16 = vld [vmem:[#allocation5 + $0x7f0] sm:$0xf0]  ;;  %v3009_v20 = vor.u32 %v3366_v11, %v3006_v12 }
  0x71   :  { %1810 = vmatpush.bf16.msra.mxu2 %v2401_v62  ;;  %v3298_v21 = vld [vmem:[#allocation5 + $0x4c4] sm:$0xf]  ;;  %v2734_v22 = vld [vmem:[#allocation5 + $0x4d0] sm:$0xf0]  ;;  %v3137_v24 = vor.u32 %v3398_v15, %v3134_v16 }
  0x72   :  { %1823 = vmatpush.bf16.msra.mxu3 %v2529_v2  ;;  %v3330_v23 = vld [vmem:[#allocation5 + $0x5c4] sm:$0xf]  ;;  %v2862_v25 = vld [vmem:[#allocation5 + $0x5d0] sm:$0xf0]  ;;  %v2737_v32 = vor.u32 %v3298_v21, %v2734_v22 }
  0x73   :  { %v3362_v26 = vld [vmem:[#allocation5 + $0x6c4] sm:$0xf]  ;;  %v2990_v27 = vld [vmem:[#allocation5 + $0x6d0] sm:$0xf0]  ;;  %v2865_v33 = vor.u32 %v3330_v23, %v2862_v25 }
  0x74   :  { %1785 = vmatpush.bf16.msra.mxu0 %v2129_v9  ;;  %1798 = vmatpush.bf16.msra.mxu1 %v2257_v13  ;;  %v3394_v28 = vld [vmem:[#allocation5 + $0x7c4] sm:$0xf]  ;;  %v3118_v31 = vld [vmem:[#allocation5 + $0x7d0] sm:$0xf0]  ;;  %v2993_v34 = vor.u32 %v3362_v26, %v2990_v27 }
  0x75   :  { %1811 = vmatpush.bf16.msra.mxu2 %v2385_v14  ;;  %v3294_v37 = vld [vmem:[#allocation5 + $0x4a4] sm:$0xf]  ;;  %v2718_v38 = vld [vmem:[#allocation5 + $0x4b0] sm:$0xf0]  ;;  %v3121_v40 = vor.u32 %v3394_v28, %v3118_v31 }
  0x76   :  { %1824 = vmatpush.bf16.msra.mxu3 %v2513_v17  ;;  %v3326_v39 = vld [vmem:[#allocation5 + $0x5a4] sm:$0xf]  ;;  %v2846_v41 = vld [vmem:[#allocation5 + $0x5b0] sm:$0xf0]  ;;  %v2721_v46 = vor.u32 %v3294_v37, %v2718_v38 }
  0x77   :  { %v3358_v42 = vld [vmem:[#allocation5 + $0x6a4] sm:$0xf]  ;;  %v2974_v43 = vld [vmem:[#allocation5 + $0x6b0] sm:$0xf0]  ;;  %1786 = vmatmul.bf16.vlgmr.msra.gmra.mxu0 %v3567_v35  ;;  %1799 = vmatmul.bf16.vlgmr.msra.gmra.mxu1 %v3569_v36  ;;  %v2849_v47 = vor.u32 %v3326_v39, %v2846_v41 }
  0x78   :  { %1830 = vmatpush.bf16.msrb.mxu0 %v2753_v18  ;;  %1843 = vmatpush.bf16.msrb.mxu1 %v2881_v19  ;;  %v3390_v44 = vld [vmem:[#allocation5 + $0x7a4] sm:$0xf]  ;;  %v3102_v45 = vld [vmem:[#allocation5 + $0x7b0] sm:$0xf0]  ;;  %v2977_v48 = vor.u32 %v3358_v42, %v2974_v43 }
  0x79   :  { %1856 = vmatpush.bf16.msrb.mxu2 %v3009_v20  ;;  %1825 = vmatmul.bf16.vlgmr.msra.gmra.mxu3 %v3565_v30  ;;  %v3290_v49 = vld [vmem:[#allocation5 + $0x484] sm:$0xf]  ;;  %v2702_v53 = vld [vmem:[#allocation5 + $0x490] sm:$0xf0]  ;;  %v3105_v56 = vor.u32 %v3390_v44, %v3102_v45 }
  0x7a   :  { %1869 = vmatpush.bf16.msrb.mxu3 %v3137_v24  ;;  %1812 = vmatmul.bf16.vlgmr.msra.gmra.mxu2 %v3563_v29  ;;  %v3322_v55 = vld [vmem:[#allocation5 + $0x584] sm:$0xf]  ;;  %v2830_v57 = vld [vmem:[#allocation5 + $0x590] sm:$0xf0]  ;;  %v2705_v62 = vor.u32 %v3290_v49, %v2702_v53  ;;  %v2244_v53 = vld [vmem:[#allocation5 + $0xe8] sm:$0xf] }
  0x7b   :  { %v3354_v58 = vld [vmem:[#allocation5 + $0x684] sm:$0xf]  ;;  %v2958_v59 = vld [vmem:[#allocation5 + $0x690] sm:$0xf0]  ;;  %v2833_v63 = vor.u32 %v3322_v55, %v2830_v57  ;;  %v3177_v55 = vld [vmem:[#allocation5 + $0xf4] sm:$0xf0] }
  0x7c   :  { %1831 = vmatpush.bf16.msrb.mxu0 %v2737_v32  ;;  %1844 = vmatpush.bf16.msrb.mxu1 %v2865_v33  ;;  %v3386_v60 = vld [vmem:[#allocation5 + $0x784] sm:$0xf]  ;;  %v3086_v61 = vld [vmem:[#allocation5 + $0x790] sm:$0xf0]  ;;  %v2961_v0 = vor.u32 %v3354_v58, %v2958_v59  ;;  %v3209_v58 = vld [vmem:[#allocation5 + $0x1f4] sm:$0xf0] }
  0x7d   :  { %1857 = vmatpush.bf16.msrb.mxu2 %v2993_v34  ;;  %v3286_v1 = vld [vmem:[#allocation5 + $0x464] sm:$0xf]  ;;  %v2686_v2 = vld [vmem:[#allocation5 + $0x470] sm:$0xf0]  ;;  %v3089_v4 = vor.u32 %v3386_v60, %v3086_v61  ;;  %v2500_v59 = vld [vmem:[#allocation5 + $0x2e8] sm:$0xf] }
  0x7e   :  { %1870 = vmatpush.bf16.msrb.mxu3 %v3121_v40  ;;  %v3318_v3 = vld [vmem:[#allocation5 + $0x564] sm:$0xf]  ;;  %v2814_v5 = vld [vmem:[#allocation5 + $0x570] sm:$0xf0]  ;;  %v2689_v10 = vor.u32 %v3286_v1, %v2686_v2  ;;  %v3241_v60 = vld [vmem:[#allocation5 + $0x2f4] sm:$0xf0]  ;;  %v2245_v2 = vor.u32 %v3177_v55, %v2244_v53 }
  0x7f   :  { %v3350_v6 = vld [vmem:[#allocation5 + $0x664] sm:$0xf]  ;;  %v2942_v7 = vld [vmem:[#allocation5 + $0x670] sm:$0xf0]  ;;  %v2817_v11 = vor.u32 %v3318_v3, %v2814_v5  ;;  %v2228_v5 = vld [vmem:[#allocation5 + $0xc8] sm:$0xf] }
  0x80   :  { %1832 = vmatpush.bf16.msrb.mxu0 %v2721_v46  ;;  %1845 = vmatpush.bf16.msrb.mxu1 %v2849_v47  ;;  %v3382_v8 = vld [vmem:[#allocation5 + $0x764] sm:$0xf]  ;;  %v3070_v9 = vld [vmem:[#allocation5 + $0x770] sm:$0xf0]  ;;  %v2945_v12 = vor.u32 %v3350_v6, %v2942_v7  ;;  %v3173_v6 = vld [vmem:[#allocation5 + $0xd4] sm:$0xf0] }
  0x81   :  { %1858 = vmatpush.bf16.msrb.mxu2 %v2977_v48  ;;  %v3282_v13 = vld [vmem:[#allocation5 + $0x444] sm:$0xf]  ;;  %v2670_v14 = vld [vmem:[#allocation5 + $0x450] sm:$0xf0]  ;;  %v3073_v16 = vor.u32 %v3382_v8, %v3070_v9  ;;  %v2356_v7 = vld [vmem:[#allocation5 + $0x1c8] sm:$0xf] }
  0x82   :  { %1871 = vmatpush.bf16.msrb.mxu3 %v3105_v56  ;;  %v3314_v15 = vld [vmem:[#allocation5 + $0x544] sm:$0xf]  ;;  %v2798_v17 = vld [vmem:[#allocation5 + $0x550] sm:$0xf0]  ;;  %v2673_v22 = vor.u32 %v3282_v13, %v2670_v14  ;;  %v2372_v56 = vld [vmem:[#allocation5 + $0x1e8] sm:$0xf]  ;;  %v2229_v14 = vor.u32 %v3173_v6, %v2228_v5 }
  0x83   :  { %v3346_v18 = vld [vmem:[#allocation5 + $0x644] sm:$0xf]  ;;  %v2926_v19 = vld [vmem:[#allocation5 + $0x650] sm:$0xf0]  ;;  %v2801_v23 = vor.u32 %v3314_v15, %v2798_v17  ;;  %v2373_v3 = vor.u32 %v3209_v58, %v2372_v56  ;;  %v3205_v9 = vld [vmem:[#allocation5 + $0x1d4] sm:$0xf0] }
  0x84   :  { %1833 = vmatpush.bf16.msrb.mxu0 %v2705_v62  ;;  %1846 = vmatpush.bf16.msrb.mxu1 %v2833_v63  ;;  %v3378_v20 = vld [vmem:[#allocation5 + $0x744] sm:$0xf]  ;;  %v3054_v21 = vld [vmem:[#allocation5 + $0x750] sm:$0xf0]  ;;  %v2929_v24 = vor.u32 %v3346_v18, %v2926_v19  ;;  %v2628_v63 = vld [vmem:[#allocation5 + $0x3e8] sm:$0xf]  ;;  %v2357_v15 = vor.u32 %v3205_v9, %v2356_v7 }
  0x85   :  { %1859 = vmatpush.bf16.msrb.mxu2 %v2961_v0  ;;  %v3278_v25 = vld [vmem:[#allocation5 + $0x424] sm:$0xf]  ;;  %v2654_v26 = vld [vmem:[#allocation5 + $0x430] sm:$0xf0]  ;;  %v3057_v28 = vor.u32 %v3378_v20, %v3054_v21  ;;  %v3273_v0 = vld [vmem:[#allocation5 + $0x3f4] sm:$0xf0] }
  0x86   :  { %1872 = vmatpush.bf16.msrb.mxu3 %v3089_v4  ;;  %v3310_v27 = vld [vmem:[#allocation5 + $0x524] sm:$0xf]  ;;  %v2782_v31 = vld [vmem:[#allocation5 + $0x530] sm:$0xf0]  ;;  %v2657_v38 = vor.u32 %v3278_v25, %v2654_v26  ;;  %v2501_v4 = vor.u32 %v3241_v60, %v2500_v59  ;;  %v2629_v8 = vor.u32 %v3273_v0, %v2628_v63  ;;  %v3269_v13 = vld [vmem:[#allocation5 + $0x3d4] sm:$0xf0] }
  0x87   :  { %v3342_v32 = vld [vmem:[#allocation5 + $0x624] sm:$0xf]  ;;  %v2910_v33 = vld [vmem:[#allocation5 + $0x630] sm:$0xf0]  ;;  %v2785_v41 = vor.u32 %v3310_v27, %v2782_v31  ;;  %v2212_v17 = vld [vmem:[#allocation5 + $0xa8] sm:$0xf] }
  0x88   :  { %1834 = vmatpush.bf16.msrb.mxu0 %v2689_v10  ;;  %1847 = vmatpush.bf16.msrb.mxu1 %v2817_v11  ;;  %v3374_v34 = vld [vmem:[#allocation5 + $0x724] sm:$0xf]  ;;  %v3038_v37 = vld [vmem:[#allocation5 + $0x730] sm:$0xf0]  ;;  %v2913_v42 = vor.u32 %v3342_v32, %v2910_v33  ;;  %v2484_v10 = vld [vmem:[#allocation5 + $0x2c8] sm:$0xf] }
  0x89   :  { %1860 = vmatpush.bf16.msrb.mxu2 %v2945_v12  ;;  %v3274_v39 = vld [vmem:[#allocation5 + $0x404] sm:$0xf]  ;;  %v2638_v40 = vld [vmem:[#allocation5 + $0x410] sm:$0xf0]  ;;  %v3041_v46 = vor.u32 %v3374_v34, %v3038_v37  ;;  %v3237_v11 = vld [vmem:[#allocation5 + $0x2d4] sm:$0xf0] }
  0x8a   :  { %1873 = vmatpush.bf16.msrb.mxu3 %v3073_v16  ;;  %v3306_v43 = vld [vmem:[#allocation5 + $0x504] sm:$0xf]  ;;  %v2766_v44 = vld [vmem:[#allocation5 + $0x510] sm:$0xf0]  ;;  %v2641_v57 = vor.u32 %v3274_v39, %v2638_v40  ;;  %v2612_v12 = vld [vmem:[#allocation5 + $0x3c8] sm:$0xf]  ;;  %v2485_v16 = vor.u32 %v3237_v11, %v2484_v10 }
  0x8b   :  { %v3338_v45 = vld [vmem:[#allocation5 + $0x604] sm:$0xf]  ;;  %v2894_v47 = vld [vmem:[#allocation5 + $0x610] sm:$0xf0]  ;;  %v2769_v61 = vor.u32 %v3306_v43, %v2766_v44  ;;  %v3169_v18 = vld [vmem:[#allocation5 + $0xb4] sm:$0xf0]  ;;  %v2613_v20 = vor.u32 %v3269_v13, %v2612_v12 }
  0x8c   :  { %1835 = vmatpush.bf16.msrb.mxu0 %v2673_v22  ;;  %1848 = vmatpush.bf16.msrb.mxu1 %v2801_v23  ;;  %v3370_v48 = vld [vmem:[#allocation5 + $0x704] sm:$0xf]  ;;  %v3022_v49 = vld [vmem:[#allocation5 + $0x710] sm:$0xf0]  ;;  %v2897_v62 = vor.u32 %v3338_v45, %v2894_v47  ;;  %v2340_v19 = vld [vmem:[#allocation5 + $0x1a8] sm:$0xf]  ;;  %v2213_v26 = vor.u32 %v3169_v18, %v2212_v17 }
  0x8d   :  { %1861 = vmatpush.bf16.msrb.mxu2 %v2929_v24  ;;  %v3025_v1 = vor.u32 %v3370_v48, %v3022_v49  ;;  %v3201_v21 = vld [vmem:[#allocation5 + $0x1b4] sm:$0xf0]  ;;  %v2468_v22 = vld [vmem:[#allocation5 + $0x2a8] sm:$0xf] }
  0x8e   :  { %1874 = vmatpush.bf16.msrb.mxu3 %v3057_v28  ;;  %v3233_v23 = vld [vmem:[#allocation5 + $0x2b4] sm:$0xf0]  ;;  %v2596_v24 = vld [vmem:[#allocation5 + $0x3a8] sm:$0xf]  ;;  %v2341_v27 = vor.u32 %v3201_v21, %v2340_v19 }
  0x8f   :  { %v3265_v25 = vld [vmem:[#allocation5 + $0x3b4] sm:$0xf0]  ;;  %v2469_v28 = vor.u32 %v3233_v23, %v2468_v22  ;;  %v2196_v31 = vld [vmem:[#allocation5 + $0x88] sm:$0xf] }
  0x90   :  { %1836 = vmatpush.bf16.msrb.mxu0 %v2657_v38  ;;  %1849 = vmatpush.bf16.msrb.mxu1 %v2785_v41  ;;  %v3165_v32 = vld [vmem:[#allocation5 + $0x94] sm:$0xf0]  ;;  %v2324_v33 = vld [vmem:[#allocation5 + $0x188] sm:$0xf]  ;;  %v2597_v34 = vor.u32 %v3265_v25, %v2596_v24 }
  0x91   :  { %1862 = vmatpush.bf16.msrb.mxu2 %v2913_v42  ;;  %v3197_v37 = vld [vmem:[#allocation5 + $0x194] sm:$0xf0]  ;;  %v2452_v38 = vld [vmem:[#allocation5 + $0x288] sm:$0xf]  ;;  %v2197_v42 = vor.u32 %v3165_v32, %v2196_v31 }
  0x92   :  { %1875 = vmatpush.bf16.msrb.mxu3 %v3041_v46  ;;  %v3229_v39 = vld [vmem:[#allocation5 + $0x294] sm:$0xf0]  ;;  %v2580_v40 = vld [vmem:[#allocation5 + $0x388] sm:$0xf]  ;;  %v2325_v43 = vor.u32 %v3197_v37, %v2324_v33 }
  0x93   :  { %v3261_v41 = vld [vmem:[#allocation5 + $0x394] sm:$0xf0]  ;;  %v2453_v44 = vor.u32 %v3229_v39, %v2452_v38  ;;  %v2180_v45 = vld [vmem:[#allocation5 + $0x68] sm:$0xf] }
  0x94   :  { %1837 = vmatpush.bf16.msrb.mxu0 %v2641_v57  ;;  %1850 = vmatpush.bf16.msrb.mxu1 %v2769_v61  ;;  %v3161_v46 = vld [vmem:[#allocation5 + $0x74] sm:$0xf0]  ;;  %v2308_v47 = vld [vmem:[#allocation5 + $0x168] sm:$0xf]  ;;  %v2581_v48 = vor.u32 %v3261_v41, %v2580_v40 }
  0x95   :  { %1863 = vmatpush.bf16.msrb.mxu2 %v2897_v62  ;;  %v3193_v49 = vld [vmem:[#allocation5 + $0x174] sm:$0xf0]  ;;  %v2436_v53 = vld [vmem:[#allocation5 + $0x268] sm:$0xf]  ;;  %v2181_v58 = vor.u32 %v3161_v46, %v2180_v45 }
  0x96   :  { %1876 = vmatpush.bf16.msrb.mxu3 %v3025_v1  ;;  %v3225_v55 = vld [vmem:[#allocation5 + $0x274] sm:$0xf0]  ;;  %v2564_v56 = vld [vmem:[#allocation5 + $0x368] sm:$0xf]  ;;  %v2309_v59 = vor.u32 %v3193_v49, %v2308_v47 }
  0x97   :  { %1838 = vmatmul.bf16.vlgmr.msrb.gmra.mxu0 %v3580_v51  ;;  %1851 = vmatmul.bf16.vlgmr.msrb.gmra.mxu1 %v3584_v54  ;;  %v3257_v57 = vld [vmem:[#allocation5 + $0x374] sm:$0xf0]  ;;  %v2437_v60 = vor.u32 %v3225_v55, %v2436_v53  ;;  %v2164_v61 = vld [vmem:[#allocation5 + $0x48] sm:$0xf] }
  0x98   :  { %1882 = vmatpush.bf16.msra.mxu0 %v2245_v2  ;;  %1895 = vmatpush.bf16.msra.mxu1 %v2373_v3  ;;  %v3157_v62 = vld [vmem:[#allocation5 + $0x54] sm:$0xf0]  ;;  %v2292_v63 = vld [vmem:[#allocation5 + $0x148] sm:$0xf]  ;;  %v2565_v0 = vor.u32 %v3257_v57, %v2564_v56 }
  0x99   :  { %1908 = vmatpush.bf16.msra.mxu2 %v2501_v4  ;;  %1877 = vmatmul.bf16.vlgmr.msrb.gmra.mxu3 %v3582_v52  ;;  %v3189_v1 = vld [vmem:[#allocation5 + $0x154] sm:$0xf0]  ;;  %v2420_v2 = vld [vmem:[#allocation5 + $0x248] sm:$0xf]  ;;  %v2165_v6 = vor.u32 %v3157_v62, %v2164_v61 }
  0x9a   :  { %1921 = vmatpush.bf16.msra.mxu3 %v2629_v8  ;;  %1864 = vmatmul.bf16.vlgmr.msrb.gmra.mxu2 %v3578_v50  ;;  %v3221_v3 = vld [vmem:[#allocation5 + $0x254] sm:$0xf0]  ;;  %v2548_v4 = vld [vmem:[#allocation5 + $0x348] sm:$0xf]  ;;  %v2293_v7 = vor.u32 %v3189_v1, %v2292_v63 }
  0x9b   :  { %v3253_v5 = vld [vmem:[#allocation5 + $0x354] sm:$0xf0]  ;;  %v2421_v8 = vor.u32 %v3221_v3, %v2420_v2  ;;  %v2148_v9 = vld [vmem:[#allocation5 + $0x28] sm:$0xf] }
  0x9c   :  { %1883 = vmatpush.bf16.msra.mxu0 %v2229_v14  ;;  %1896 = vmatpush.bf16.msra.mxu1 %v2357_v15  ;;  %v3153_v10 = vld [vmem:[#allocation5 + $0x34] sm:$0xf0]  ;;  %v2276_v11 = vld [vmem:[#allocation5 + $0x128] sm:$0xf]  ;;  %v2549_v12 = vor.u32 %v3253_v5, %v2548_v4 }
  0x9d   :  { %1909 = vmatpush.bf16.msra.mxu2 %v2485_v16  ;;  %v3185_v13 = vld [vmem:[#allocation5 + $0x134] sm:$0xf0]  ;;  %v2404_v14 = vld [vmem:[#allocation5 + $0x228] sm:$0xf]  ;;  %v2149_v18 = vor.u32 %v3153_v10, %v2148_v9 }
  0x9e   :  { %1922 = vmatpush.bf16.msra.mxu3 %v2613_v20  ;;  %v3217_v15 = vld [vmem:[#allocation5 + $0x234] sm:$0xf0]  ;;  %v2532_v16 = vld [vmem:[#allocation5 + $0x328] sm:$0xf]  ;;  %v2277_v21 = vor.u32 %v3185_v13, %v2276_v11 }
  0x9f   :  { %v3249_v17 = vld [vmem:[#allocation5 + $0x334] sm:$0xf0]  ;;  %v2132_v19 = vld [vmem:[#allocation5 + $0x8] sm:$0xf]  ;;  %v2405_v22 = vor.u32 %v3217_v15, %v2404_v14 }
  0xa0   :  { %1884 = vmatpush.bf16.msra.mxu0 %v2213_v26  ;;  %1897 = vmatpush.bf16.msra.mxu1 %v2341_v27  ;;  %v3149_v20 = vld [vmem:[#allocation5 + $0x14] sm:$0xf0]  ;;  %v2260_v23 = vld [vmem:[#allocation5 + $0x108] sm:$0xf]  ;;  %v2533_v26 = vor.u32 %v3249_v17, %v2532_v16 }
  0xa1   :  { %1910 = vmatpush.bf16.msra.mxu2 %v2469_v28  ;;  %v3181_v24 = vld [vmem:[#allocation5 + $0x114] sm:$0xf0]  ;;  %v2388_v25 = vld [vmem:[#allocation5 + $0x208] sm:$0xf]  ;;  %v2133_v37 = vor.u32 %v3149_v20, %v2132_v19 }
  0xa2   :  { %1923 = vmatpush.bf16.msra.mxu3 %v2597_v34  ;;  %v3213_v27 = vld [vmem:[#allocation5 + $0x214] sm:$0xf0]  ;;  %v2516_v28 = vld [vmem:[#allocation5 + $0x308] sm:$0xf]  ;;  %v2261_v41 = vor.u32 %v3181_v24, %v2260_v23 }
  0xa3   :  { %v3245_v31 = vld [vmem:[#allocation5 + $0x314] sm:$0xf0]  ;;  %v2756_v32 = vld [vmem:[#allocation5 + $0x4e8] sm:$0xf] }
  0xa4   :  { %1885 = vmatpush.bf16.msra.mxu0 %v2197_v42  ;;  %1898 = vmatpush.bf16.msra.mxu1 %v2325_v43  ;;  %v3305_v33 = vld [vmem:[#allocation5 + $0x4f4] sm:$0xf0]  ;;  %v2884_v34 = vld [vmem:[#allocation5 + $0x5e8] sm:$0xf]  ;;  %v2389_v42 = vor.u32 %v3213_v27, %v2388_v25  ;;  %v2517_v45 = vor.u32 %v3245_v31, %v2516_v28 }
  0xa5   :  { %1911 = vmatpush.bf16.msra.mxu2 %v2453_v44  ;;  %v3337_v38 = vld [vmem:[#allocation5 + $0x5f4] sm:$0xf0]  ;;  %v3012_v39 = vld [vmem:[#allocation5 + $0x6e8] sm:$0xf]  ;;  %v2757_v46 = vor.u32 %v3305_v33, %v2756_v32 }
  0xa6   :  { %1924 = vmatpush.bf16.msra.mxu3 %v2581_v48  ;;  %v3369_v40 = vld [vmem:[#allocation5 + $0x6f4] sm:$0xf0]  ;;  %v3140_v43 = vld [vmem:[#allocation5 + $0x7e8] sm:$0xf]  ;;  %v2885_v47 = vor.u32 %v3337_v38, %v2884_v34 }
  0xa7   :  { %v3401_v44 = vld [vmem:[#allocation5 + $0x7f4] sm:$0xf0]  ;;  %v3013_v48 = vor.u32 %v3369_v40, %v3012_v39  ;;  %v2740_v49 = vld [vmem:[#allocation5 + $0x4c8] sm:$0xf] }
  0xa8   :  { %1886 = vmatpush.bf16.msra.mxu0 %v2181_v58  ;;  %1899 = vmatpush.bf16.msra.mxu1 %v2309_v59  ;;  %v3301_v53 = vld [vmem:[#allocation5 + $0x4d4] sm:$0xf0]  ;;  %v2868_v55 = vld [vmem:[#allocation5 + $0x5c8] sm:$0xf]  ;;  %v3141_v56 = vor.u32 %v3401_v44, %v3140_v43  ;;  %v3602_v44 = vld [vmem:[#allocation7] sm:$0xf] }
  0xa9   :  { %1912 = vmatpush.bf16.msra.mxu2 %v2437_v60  ;;  %v3333_v57 = vld [vmem:[#allocation5 + $0x5d4] sm:$0xf0]  ;;  %v2996_v58 = vld [vmem:[#allocation5 + $0x6c8] sm:$0xf]  ;;  %v2741_v62 = vor.u32 %v3301_v53, %v2740_v49 }
  0xaa   :  { %1925 = vmatpush.bf16.msra.mxu3 %v2565_v0  ;;  %v3365_v59 = vld [vmem:[#allocation5 + $0x6d4] sm:$0xf0]  ;;  %v3124_v60 = vld [vmem:[#allocation5 + $0x7c8] sm:$0xf]  ;;  %v2869_v63 = vor.u32 %v3333_v57, %v2868_v55 }
  0xab   :  { %v3397_v61 = vld [vmem:[#allocation5 + $0x7d4] sm:$0xf0]  ;;  %v2997_v0 = vor.u32 %v3365_v59, %v2996_v58  ;;  %v2724_v1 = vld [vmem:[#allocation5 + $0x4a8] sm:$0xf] }
  0xac   :  { %1887 = vmatpush.bf16.msra.mxu0 %v2165_v6  ;;  %1900 = vmatpush.bf16.msra.mxu1 %v2293_v7  ;;  %v3297_v2 = vld [vmem:[#allocation5 + $0x4b4] sm:$0xf0]  ;;  %v2852_v3 = vld [vmem:[#allocation5 + $0x5a8] sm:$0xf]  ;;  %v3125_v4 = vor.u32 %v3397_v61, %v3124_v60 }
  0xad   :  { %1913 = vmatpush.bf16.msra.mxu2 %v2421_v8  ;;  %v3329_v5 = vld [vmem:[#allocation5 + $0x5b4] sm:$0xf0]  ;;  %v2980_v6 = vld [vmem:[#allocation5 + $0x6a8] sm:$0xf]  ;;  %v2725_v10 = vor.u32 %v3297_v2, %v2724_v1 }
  0xae   :  { %1926 = vmatpush.bf16.msra.mxu3 %v2549_v12  ;;  %v3361_v7 = vld [vmem:[#allocation5 + $0x6b4] sm:$0xf0]  ;;  %v3108_v8 = vld [vmem:[#allocation5 + $0x7a8] sm:$0xf]  ;;  %v2853_v11 = vor.u32 %v3329_v5, %v2852_v3 }
  0xaf   :  { %v3393_v9 = vld [vmem:[#allocation5 + $0x7b4] sm:$0xf0]  ;;  %v2981_v12 = vor.u32 %v3361_v7, %v2980_v6  ;;  %v2708_v13 = vld [vmem:[#allocation5 + $0x488] sm:$0xf] }
  0xb0   :  { %1888 = vmatpush.bf16.msra.mxu0 %v2149_v18  ;;  %1901 = vmatpush.bf16.msra.mxu1 %v2277_v21  ;;  %v3293_v14 = vld [vmem:[#allocation5 + $0x494] sm:$0xf0]  ;;  %v2836_v15 = vld [vmem:[#allocation5 + $0x588] sm:$0xf]  ;;  %v3109_v16 = vor.u32 %v3393_v9, %v3108_v8 }
  0xb1   :  { %1914 = vmatpush.bf16.msra.mxu2 %v2405_v22  ;;  %v3325_v17 = vld [vmem:[#allocation5 + $0x594] sm:$0xf0]  ;;  %v2964_v18 = vld [vmem:[#allocation5 + $0x688] sm:$0xf]  ;;  %v2709_v22 = vor.u32 %v3293_v14, %v2708_v13 }
  0xb2   :  { %1927 = vmatpush.bf16.msra.mxu3 %v2533_v26  ;;  %v3357_v19 = vld [vmem:[#allocation5 + $0x694] sm:$0xf0]  ;;  %v3092_v20 = vld [vmem:[#allocation5 + $0x788] sm:$0xf]  ;;  %v2837_v23 = vor.u32 %v3325_v17, %v2836_v15 }
  0xb3   :  { %v3389_v21 = vld [vmem:[#allocation5 + $0x794] sm:$0xf0]  ;;  %v2965_v24 = vor.u32 %v3357_v19, %v2964_v18  ;;  %v2692_v25 = vld [vmem:[#allocation5 + $0x468] sm:$0xf] }
  0xb4   :  { %1889 = vmatpush.bf16.msra.mxu0 %v2133_v37  ;;  %1902 = vmatpush.bf16.msra.mxu1 %v2261_v41  ;;  %v3289_v26 = vld [vmem:[#allocation5 + $0x474] sm:$0xf0]  ;;  %v2820_v27 = vld [vmem:[#allocation5 + $0x568] sm:$0xf]  ;;  %v3093_v28 = vor.u32 %v3389_v21, %v3092_v20 }
  0xb5   :  { %1915 = vmatpush.bf16.msra.mxu2 %v2389_v42  ;;  %v3321_v31 = vld [vmem:[#allocation5 + $0x574] sm:$0xf0]  ;;  %v2948_v32 = vld [vmem:[#allocation5 + $0x668] sm:$0xf]  ;;  %v2693_v38 = vor.u32 %v3289_v26, %v2692_v25  ;;  %v2374_v26 = vld [vmem:[#allocation5 + $0x1f8] sm:$0xf0] }
  0xb6   :  { %1928 = vmatpush.bf16.msra.mxu3 %v2517_v45  ;;  %v3353_v33 = vld [vmem:[#allocation5 + $0x674] sm:$0xf0]  ;;  %v3076_v34 = vld [vmem:[#allocation5 + $0x768] sm:$0xf]  ;;  %v2821_v40 = vor.u32 %v3321_v31, %v2820_v27  ;;  %v3239_v27 = vld [vmem:[#allocation5 + $0x2ec] sm:$0xf] }
  0xb7   :  { %1890 = vmatmul.bf16.vlgmr.msra.gmra.mxu0 %v3567_v35  ;;  %1903 = vmatmul.bf16.vlgmr.msra.gmra.mxu1 %v3569_v36  ;;  %v3385_v37 = vld [vmem:[#allocation5 + $0x774] sm:$0xf0]  ;;  %v2676_v39 = vld [vmem:[#allocation5 + $0x448] sm:$0xf]  ;;  %v2949_v41 = vor.u32 %v3353_v33, %v2948_v32 }
  0xb8   :  { %1934 = vmatpush.bf16.msrb.mxu0 %v2757_v46  ;;  %1947 = vmatpush.bf16.msrb.mxu1 %v2885_v47  ;;  %v3285_v42 = vld [vmem:[#allocation5 + $0x454] sm:$0xf0]  ;;  %v2804_v43 = vld [vmem:[#allocation5 + $0x548] sm:$0xf]  ;;  %v3077_v45 = vor.u32 %v3385_v37, %v3076_v34  ;;  %v3271_v34 = vld [vmem:[#allocation5 + $0x3ec] sm:$0xf] }
  0xb9   :  { %1960 = vmatpush.bf16.msrb.mxu2 %v3013_v48  ;;  %1929 = vmatmul.bf16.vlgmr.msra.gmra.mxu3 %v3565_v30  ;;  %v3317_v46 = vld [vmem:[#allocation5 + $0x554] sm:$0xf0]  ;;  %v2932_v47 = vld [vmem:[#allocation5 + $0x648] sm:$0xf]  ;;  %v2677_v55 = vor.u32 %v3285_v42, %v2676_v39  ;;  %v2630_v37 = vld [vmem:[#allocation5 + $0x3f8] sm:$0xf0] }
  0xba   :  { %1973 = vmatpush.bf16.msrb.mxu3 %v3141_v56  ;;  %1916 = vmatmul.bf16.vlgmr.msra.gmra.mxu2 %v3563_v29  ;;  %v3349_v48 = vld [vmem:[#allocation5 + $0x654] sm:$0xf0]  ;;  %v3060_v49 = vld [vmem:[#allocation5 + $0x748] sm:$0xf]  ;;  %v358_v56 = vperm.slane %v3602_v44, 0  ;;  %v2805_v57 = vor.u32 %v3317_v46, %v2804_v43 }
  0xbb   :  { %v3381_v53 = vld [vmem:[#allocation5 + $0x754] sm:$0xf0]  ;;  %v2933_v58 = vor.u32 %v3349_v48, %v2932_v47  ;;  %v2660_v59 = vld [vmem:[#allocation5 + $0x428] sm:$0xf]  ;;  %v2230_v46 = vld [vmem:[#allocation5 + $0xd8] sm:$0xf0] }
  0xbc   :  { %1935 = vmatpush.bf16.msrb.mxu0 %v2741_v62  ;;  %1948 = vmatpush.bf16.msrb.mxu1 %v2869_v63  ;;  %v3281_v60 = vld [vmem:[#allocation5 + $0x434] sm:$0xf0]  ;;  %v2788_v61 = vld [vmem:[#allocation5 + $0x528] sm:$0xf]  ;;  %v3061_v63 = vor.u32 %v3381_v53, %v3060_v49  ;;  %v3203_v47 = vld [vmem:[#allocation5 + $0x1cc] sm:$0xf]  ;;  %v2633_v49 = vor.u32 %v3271_v34, %v2630_v37 }
  0xbd   :  { %1961 = vmatpush.bf16.msrb.mxu2 %v2997_v0  ;;  %v3313_v0 = vld [vmem:[#allocation5 + $0x534] sm:$0xf0]  ;;  %v2916_v1 = vld [vmem:[#allocation5 + $0x628] sm:$0xf]  ;;  %v2661_v6 = vor.u32 %v3281_v60, %v2660_v59  ;;  %v2358_v53 = vld [vmem:[#allocation5 + $0x1d8] sm:$0xf0] }
  0xbe   :  { %1974 = vmatpush.bf16.msrb.mxu3 %v3125_v4  ;;  %v3345_v2 = vld [vmem:[#allocation5 + $0x634] sm:$0xf0]  ;;  %v3044_v3 = vld [vmem:[#allocation5 + $0x728] sm:$0xf]  ;;  %v3223_v34 = vld [vmem:[#allocation5 + $0x26c] sm:$0xf] }
  0xbf   :  { %v3377_v4 = vld [vmem:[#allocation5 + $0x734] sm:$0xf0]  ;;  %v2644_v7 = vld [vmem:[#allocation5 + $0x408] sm:$0xf]  ;;  %v2438_v37 = vld [vmem:[#allocation5 + $0x278] sm:$0xf0] }
  0xc0   :  { %1936 = vmatpush.bf16.msrb.mxu0 %v2725_v10  ;;  %1949 = vmatpush.bf16.msrb.mxu1 %v2853_v11  ;;  %v3277_v8 = vld [vmem:[#allocation5 + $0x414] sm:$0xf0]  ;;  %v2789_v10 = vor.u32 %v3313_v0, %v2788_v61  ;;  %v2917_v11 = vor.u32 %v3345_v2, %v2916_v1  ;;  %v2900_v14 = vld [vmem:[#allocation5 + $0x608] sm:$0xf]  ;;  %v3045_v15 = vor.u32 %v3377_v4, %v3044_v3  ;;  %v3167_v0 = vld [vmem:[#allocation5 + $0xac] sm:$0xf] }
  0xc1   :  { %1962 = vmatpush.bf16.msrb.mxu2 %v2981_v12  ;;  %v2772_v12 = vld [vmem:[#allocation5 + $0x508] sm:$0xf]  ;;  %v3309_v13 = vld [vmem:[#allocation5 + $0x514] sm:$0xf0]  ;;  %v2645_v25 = vor.u32 %v3277_v8, %v2644_v7  ;;  %v2214_v1 = vld [vmem:[#allocation5 + $0xb8] sm:$0xf0] }
  0xc2   :  { %1975 = vmatpush.bf16.msrb.mxu3 %v3109_v16  ;;  %v3341_v16 = vld [vmem:[#allocation5 + $0x614] sm:$0xf0]  ;;  %v3028_v17 = vld [vmem:[#allocation5 + $0x708] sm:$0xf]  ;;  %v2773_v32 = vor.u32 %v3309_v13, %v2772_v12  ;;  %v3199_v2 = vld [vmem:[#allocation5 + $0x1ac] sm:$0xf] }
  0xc3   :  { %v3373_v18 = vld [vmem:[#allocation5 + $0x714] sm:$0xf0]  ;;  %v2901_v33 = vor.u32 %v3341_v16, %v2900_v14  ;;  %v2342_v4 = vld [vmem:[#allocation5 + $0x1b8] sm:$0xf0]  ;;  %v3263_v7 = vld [vmem:[#allocation5 + $0x3ac] sm:$0xf] }
  0xc4   :  { %1937 = vmatpush.bf16.msrb.mxu0 %v2709_v22  ;;  %1950 = vmatpush.bf16.msrb.mxu1 %v2837_v23  ;;  %v1696_v62 = vpop.f32.mrf.mxu1  ;;  %v1683_v5 = vpop.f32.mrf.mxu0  ;;  %v3175_v22 = vld [vmem:[#allocation5 + $0xec] sm:$0xf]  ;;  %v2246_v23 = vld [vmem:[#allocation5 + $0xf8] sm:$0xf0]  ;;  %v3029_v39 = vor.u32 %v3373_v18, %v3028_v17 }
  0xc5   :  { %1963 = vmatpush.bf16.msrb.mxu2 %v2965_v24  ;;  %v1684_v9 = vadd.f32 %v1683_v5, %v358_v56  ;;  %v3207_v24 = vld [vmem:[#allocation5 + $0x1ec] sm:$0xf]  ;;  %v2486_v56 = vld [vmem:[#allocation5 + $0x2d8] sm:$0xf0] }
  0xc6   :  { %1976 = vmatpush.bf16.msrb.mxu3 %v3093_v28  ;;  %v2502_v28 = vld [vmem:[#allocation5 + $0x2f8] sm:$0xf0]  ;;  %v2377_v42 = vor.u32 %v3207_v24, %v2374_v26  ;;  %v3231_v5 = vld [vmem:[#allocation5 + $0x2ac] sm:$0xf] }
  0xc7   :  { %v1697_v19 = vadd.f32 %v1696_v62, %v1684_v9  ;;  %v2505_v43 = vor.u32 %v3239_v27, %v2502_v28  ;;  %v2361_v62 = vor.u32 %v3203_v47, %v2358_v53  ;;  %v2598_v8 = vld [vmem:[#allocation5 + $0x3b8] sm:$0xf0]  ;;  %v2217_v9 = vor.u32 %v3167_v0, %v2214_v1  ;;  %v3163_v12 = vld [vmem:[#allocation5 + $0x8c] sm:$0xf] }
  0xc8   :  { %1938 = vmatpush.bf16.msrb.mxu0 %v2693_v38  ;;  %1951 = vmatpush.bf16.msrb.mxu1 %v2821_v40  ;;  %v2249_v40 = vor.u32 %v3175_v22, %v2246_v23  ;;  %v2198_v13 = vld [vmem:[#allocation5 + $0x98] sm:$0xf0]  ;;  %v3195_v14 = vld [vmem:[#allocation5 + $0x18c] sm:$0xf] }
  0xc9   :  { %1964 = vmatpush.bf16.msrb.mxu2 %v2949_v41  ;;  %v1709_v20 = vpop.f32.mrf.mxu2  ;;  %v1722_v21 = vpop.f32.mrf.mxu3  ;;  %v2326_v16 = vld [vmem:[#allocation5 + $0x198] sm:$0xf0]  ;;  %v3227_v17 = vld [vmem:[#allocation5 + $0x28c] sm:$0xf] }
  0xca   :  { %1977 = vmatpush.bf16.msrb.mxu3 %v3077_v45  ;;  %v1710_v31 = vadd.f32 %v1709_v20, %v1697_v19  ;;  %v3171_v45 = vld [vmem:[#allocation5 + $0xcc] sm:$0xf]  ;;  %v2454_v18 = vld [vmem:[#allocation5 + $0x298] sm:$0xf0]  ;;  %v2329_v23 = vor.u32 %v3195_v14, %v2326_v16 }
  0xcb   :  { %v2233_v59 = vor.u32 %v3171_v45, %v2230_v46  ;;  %v3259_v19 = vld [vmem:[#allocation5 + $0x38c] sm:$0xf]  ;;  %v2582_v20 = vld [vmem:[#allocation5 + $0x398] sm:$0xf0]  ;;  %v2457_v24 = vor.u32 %v3227_v17, %v2454_v18  ;;  %v2441_v45 = vor.u32 %v3223_v34, %v2438_v37 }
  0xcc   :  { %1939 = vmatpush.bf16.msrb.mxu0 %v2677_v55  ;;  %1952 = vmatpush.bf16.msrb.mxu1 %v2805_v57  ;;  %v1698_v38 = vpop.f32.mrf.mxu1  ;;  %v3605_v41 = vadd.f32 %v1722_v21, %v1710_v31  ;;  %v1685_v48 = vpop.f32.mrf.mxu0  ;;  %v3235_v55 = vld [vmem:[#allocation5 + $0x2cc] sm:$0xf]  ;;  %v2201_v21 = vor.u32 %v3163_v12, %v2198_v13  ;;  %v2182_v26 = vld [vmem:[#allocation5 + $0x78] sm:$0xf0] }
  0xcd   :  { %1965 = vmatpush.bf16.msrb.mxu2 %v2933_v58  ;;  %v3267_v57 = vld [vmem:[#allocation5 + $0x3cc] sm:$0xf]  ;;  %v2614_v58 = vld [vmem:[#allocation5 + $0x3d8] sm:$0xf0] }
  0xce   :  { %1978 = vmatpush.bf16.msrb.mxu3 %v3061_v63  ;;  %v2489_v63 = vor.u32 %v3235_v55, %v2486_v56  ;;  %v2617_v3 = vor.u32 %v3267_v57, %v2614_v58  ;;  %v3191_v27 = vld [vmem:[#allocation5 + $0x16c] sm:$0xf]  ;;  %v2166_v47 = vld [vmem:[#allocation5 + $0x58] sm:$0xf0] }
  0xcf   :  { %v3255_v38 = vld [vmem:[#allocation5 + $0x36c] sm:$0xf]  ;;  %v2294_v53 = vld [vmem:[#allocation5 + $0x158] sm:$0xf0] }
  0xd0   :  { %1940 = vmatpush.bf16.msrb.mxu0 %v2661_v6  ;;  %1953 = vmatpush.bf16.msrb.mxu1 %v2789_v10  ;;  %v2470_v6 = vld [vmem:[#allocation5 + $0x2b8] sm:$0xf0]  ;;  %v2345_v10 = vor.u32 %v3199_v2, %v2342_v4  ;;  %v3155_v46 = vld [vmem:[#allocation5 + $0x4c] sm:$0xf] }
  0xd1   :  { %1966 = vmatpush.bf16.msrb.mxu2 %v2917_v11  ;;  %v1711_v60 = vpop.f32.mrf.mxu2  ;;  %v1724_v61 = vpop.f32.mrf.mxu3  ;;  %v2473_v11 = vor.u32 %v3231_v5, %v2470_v6  ;;  %v3187_v48 = vld [vmem:[#allocation5 + $0x14c] sm:$0xf]  ;;  %v2422_v56 = vld [vmem:[#allocation5 + $0x258] sm:$0xf0] }
  0xd2   :  { %1979 = vmatpush.bf16.msrb.mxu3 %v3045_v15  ;;  %v2601_v15 = vor.u32 %v3263_v7, %v2598_v8  ;;  %v3219_v55 = vld [vmem:[#allocation5 + $0x24c] sm:$0xf]  ;;  %v2550_v60 = vld [vmem:[#allocation5 + $0x358] sm:$0xf0]  ;;  %v2169_v61 = vor.u32 %v3155_v46, %v2166_v47  ;;  %v2297_v0 = vor.u32 %v3187_v48, %v2294_v53 }
  0xd3   :  { %v2425_v1 = vor.u32 %v3219_v55, %v2422_v56  ;;  %v3151_v2 = vld [vmem:[#allocation5 + $0x2c] sm:$0xf]  ;;  %v2278_v7 = vld [vmem:[#allocation5 + $0x138] sm:$0xf0] }
  0xd4   :  { %1941 = vmatpush.bf16.msrb.mxu0 %v2645_v25  ;;  %1954 = vmatpush.bf16.msrb.mxu1 %v2773_v32  ;;  %v1735_v22 = vpop.f32.mrf.mxu0  ;;  %v3159_v25 = vld [vmem:[#allocation5 + $0x6c] sm:$0xf]  ;;  %v1748_v31 = vpop.f32.mrf.mxu1  ;;  %v2585_v32 = vor.u32 %v3259_v19, %v2582_v20  ;;  %v2134_v14 = vld [vmem:[#allocation5 + $0x18] sm:$0xf0] }
  0xd5   :  { %1967 = vmatpush.bf16.msrb.mxu2 %v2901_v33  ;;  %v1736_v28 = vadd.f32 %v1735_v22, %v3605_v41  ;;  %v2310_v33 = vld [vmem:[#allocation5 + $0x178] sm:$0xf0]  ;;  %v3183_v4 = vld [vmem:[#allocation5 + $0x12c] sm:$0xf] }
  0xd6   :  { %1980 = vmatpush.bf16.msrb.mxu3 %v3029_v39  ;;  %v2566_v39 = vld [vmem:[#allocation5 + $0x378] sm:$0xf0]  ;;  %v3215_v8 = vld [vmem:[#allocation5 + $0x22c] sm:$0xf] }
  0xd7   :  { %1942 = vmatmul.bf16.vlgmr.msrb.gmra.mxu0 %v3580_v51  ;;  %1955 = vmatmul.bf16.vlgmr.msrb.gmra.mxu1 %v3584_v54  ;;  %v2569_v41 = vor.u32 %v3255_v38, %v2566_v39  ;;  %v3147_v13 = vld [vmem:[#allocation5 + $0xc] sm:$0xf]  ;;  %v2262_v18 = vld [vmem:[#allocation5 + $0x118] sm:$0xf0] }
  0xd8   :  { %1986 = vmatpush.bf16.msra.mxu0 %v2249_v40  ;;  %1999 = vmatpush.bf16.msra.mxu1 %v2377_v42  ;;  %v1749_v40 = vadd.f32 %v1748_v31, %v1736_v28  ;;  %v2185_v42 = vor.u32 %v3159_v25, %v2182_v26  ;;  %v3179_v17 = vld [vmem:[#allocation5 + $0x10c] sm:$0xf]  ;;  %v2390_v22 = vld [vmem:[#allocation5 + $0x218] sm:$0xf0]  ;;  %v2137_v31 = vor.u32 %v3147_v13, %v2134_v14  ;;  %v359_v13 = vperm.slane %v3602_v44, 1 }
  0xd9   :  { %2012 = vmatpush.bf16.msra.mxu2 %v2505_v43  ;;  %1981 = vmatmul.bf16.vlgmr.msrb.gmra.mxu3 %v3582_v52  ;;  %v2313_v43 = vor.u32 %v3191_v27, %v2310_v33  ;;  %v3211_v19 = vld [vmem:[#allocation5 + $0x20c] sm:$0xf]  ;;  %v2758_v27 = vld [vmem:[#allocation5 + $0x4f8] sm:$0xf0]  ;;  %v2265_v37 = vor.u32 %v3179_v17, %v2262_v18 }
  0xda   :  { %2025 = vmatpush.bf16.msra.mxu3 %v2633_v49  ;;  %1968 = vmatmul.bf16.vlgmr.msrb.gmra.mxu2 %v3578_v50  ;;  %v3303_v26 = vld [vmem:[#allocation5 + $0x4ec] sm:$0xf]  ;;  %v3014_v34 = vld [vmem:[#allocation5 + $0x6f8] sm:$0xf0]  ;;  %v2393_v38 = vor.u32 %v3211_v19, %v2390_v22 }
  0xdb   :  { %v3335_v28 = vld [vmem:[#allocation5 + $0x5ec] sm:$0xf]  ;;  %v2742_v48 = vld [vmem:[#allocation5 + $0x4d8] sm:$0xf0] }
  0xdc   :  { %1987 = vmatpush.bf16.msra.mxu0 %v2233_v59  ;;  %2000 = vmatpush.bf16.msra.mxu1 %v2361_v62  ;;  %v1774_v58 = vpop.f32.mrf.mxu3  ;;  %v3251_v59 = vld [vmem:[#allocation5 + $0x34c] sm:$0xf]  ;;  %v1750_v5 = vpop.f32.mrf.mxu1  ;;  %v2870_v53 = vld [vmem:[#allocation5 + $0x5d8] sm:$0xf0] }
  0xdd   :  { %2013 = vmatpush.bf16.msra.mxu2 %v2489_v63  ;;  %v1761_v49 = vpop.f32.mrf.mxu2  ;;  %v1737_v63 = vpop.f32.mrf.mxu0  ;;  %v2553_v6 = vor.u32 %v3251_v59, %v2550_v60  ;;  %v3367_v33 = vld [vmem:[#allocation5 + $0x6ec] sm:$0xf]  ;;  %v2998_v56 = vld [vmem:[#allocation5 + $0x6d8] sm:$0xf0] }
  0xde   :  { %2026 = vmatpush.bf16.msra.mxu3 %v2617_v3  ;;  %v1762_v57 = vadd.f32 %v1761_v49, %v1749_v40  ;;  %v2150_v3 = vld [vmem:[#allocation5 + $0x38] sm:$0xf0]  ;;  %v3399_v39 = vld [vmem:[#allocation5 + $0x7ec] sm:$0xf]  ;;  %v3017_v46 = vor.u32 %v3367_v33, %v3014_v34 }
  0xdf   :  { %v2153_v12 = vor.u32 %v3151_v2, %v2150_v3  ;;  %v3142_v40 = vld [vmem:[#allocation5 + $0x7f8] sm:$0xf0]  ;;  %v3299_v47 = vld [vmem:[#allocation5 + $0x4cc] sm:$0xf] }
  0xe0   :  { %1988 = vmatpush.bf16.msra.mxu0 %v2217_v9  ;;  %2001 = vmatpush.bf16.msra.mxu1 %v2345_v10  ;;  %v3612_v62 = vadd.f32 %v1774_v58, %v1762_v57  ;;  %v2406_v9 = vld [vmem:[#allocation5 + $0x238] sm:$0xf0]  ;;  %v3247_v10 = vld [vmem:[#allocation5 + $0x32c] sm:$0xf]  ;;  %v2745_v59 = vor.u32 %v3299_v47, %v2742_v48 }
  0xe1   :  { %2014 = vmatpush.bf16.msra.mxu2 %v2473_v11  ;;  %v2534_v11 = vld [vmem:[#allocation5 + $0x338] sm:$0xf0]  ;;  %v2409_v16 = vor.u32 %v3215_v8, %v2406_v9  ;;  %v3331_v49 = vld [vmem:[#allocation5 + $0x5cc] sm:$0xf] }
  0xe2   :  { %2027 = vmatpush.bf16.msra.mxu3 %v2601_v15  ;;  %v2281_v15 = vor.u32 %v3183_v4, %v2278_v7  ;;  %v3363_v55 = vld [vmem:[#allocation5 + $0x6cc] sm:$0xf]  ;;  %v3126_v58 = vld [vmem:[#allocation5 + $0x7d8] sm:$0xf0]  ;;  %v2873_v60 = vor.u32 %v3331_v49, %v2870_v53  ;;  %3409 = vtanh.f32 %v3612_v62 }
  0xe3   :  { %v3395_v57 = vld [vmem:[#allocation5 + $0x7cc] sm:$0xf]  ;;  %v2854_v3 = vld [vmem:[#allocation5 + $0x5b8] sm:$0xf0] }
  0xe4   :  { %1989 = vmatpush.bf16.msra.mxu0 %v2201_v21  ;;  %2002 = vmatpush.bf16.msra.mxu1 %v2329_v23  ;;  %v2537_v21 = vor.u32 %v3247_v10, %v2534_v11  ;;  %v3243_v23 = vld [vmem:[#allocation5 + $0x30c] sm:$0xf]  ;;  %v1776_v25 = vpop.f32.mrf.mxu3  ;;  %v3129_v2 = vor.u32 %v3395_v57, %v3126_v58  ;;  %v2982_v5 = vld [vmem:[#allocation5 + $0x6b8] sm:$0xf0] }
  0xe5   :  { %2015 = vmatpush.bf16.msra.mxu2 %v2457_v24  ;;  %v1763_v20 = vpop.f32.mrf.mxu2  ;;  %v2518_v24 = vld [vmem:[#allocation5 + $0x318] sm:$0xf0]  ;;  %v3295_v63 = vld [vmem:[#allocation5 + $0x4ac] sm:$0xf] }
  0xe6   :  { %2028 = vmatpush.bf16.msra.mxu3 %v2585_v32  ;;  %v2886_v32 = vld [vmem:[#allocation5 + $0x5f8] sm:$0xf0]  ;;  %v3359_v4 = vld [vmem:[#allocation5 + $0x6ac] sm:$0xf] }
  0xe7   :  { %v3110_v7 = vld [vmem:[#allocation5 + $0x7b8] sm:$0xf0]  ;;  %v3291_v9 = vld [vmem:[#allocation5 + $0x48c] sm:$0xf]  ;;  %v2985_v11 = vor.u32 %v3359_v4, %v2982_v5 }
  0xe8   :  { %1990 = vmatpush.bf16.msra.mxu0 %v2185_v42  ;;  %2003 = vmatpush.bf16.msra.mxu1 %v2313_v43  ;;  %v2521_v42 = vor.u32 %v3243_v23, %v2518_v24  ;;  %v2761_v43 = vor.u32 %v3303_v26, %v2758_v27  ;;  %v3387_v17 = vld [vmem:[#allocation5 + $0x78c] sm:$0xf]  ;;  %v2694_v22 = vld [vmem:[#allocation5 + $0x478] sm:$0xf0] }
  0xe9   :  { %2016 = vmatpush.bf16.msra.mxu2 %v2441_v45  ;;  %v2889_v45 = vor.u32 %v3335_v28, %v2886_v32  ;;  %v3319_v23 = vld [vmem:[#allocation5 + $0x56c] sm:$0xf]  ;;  %v2822_v27 = vld [vmem:[#allocation5 + $0x578] sm:$0xf0] }
  0xea   :  { %2029 = vmatpush.bf16.msra.mxu3 %v2569_v41  ;;  %v3145_v41 = vor.u32 %v3399_v39, %v3142_v40  ;;  %v3351_v28 = vld [vmem:[#allocation5 + $0x66c] sm:$0xf]  ;;  %v3078_v33 = vld [vmem:[#allocation5 + $0x778] sm:$0xf0] }
  0xeb   :  { %v3383_v32 = vld [vmem:[#allocation5 + $0x76c] sm:$0xf]  ;;  %v2806_v47 = vld [vmem:[#allocation5 + $0x558] sm:$0xf0] }
  0xec   :  { %1991 = vmatpush.bf16.msra.mxu0 %v2169_v61  ;;  %2004 = vmatpush.bf16.msra.mxu1 %v2297_v0  ;;  %v3001_v61 = vor.u32 %v3363_v55, %v2998_v56  ;;  %v2726_v0 = vld [vmem:[#allocation5 + $0x4b8] sm:$0xf0]  ;;  %v3283_v40 = vld [vmem:[#allocation5 + $0x44c] sm:$0xf] }
  0xed   :  { %2017 = vmatpush.bf16.msra.mxu2 %v2425_v1  ;;  %v3327_v1 = vld [vmem:[#allocation5 + $0x5ac] sm:$0xf]  ;;  %v2729_v8 = vor.u32 %v3295_v63, %v2726_v0  ;;  %v2934_v49 = vld [vmem:[#allocation5 + $0x658] sm:$0xf0] }
  0xee   :  { %2030 = vmatpush.bf16.msra.mxu3 %v2553_v6  ;;  %v3391_v6 = vld [vmem:[#allocation5 + $0x7ac] sm:$0xf]  ;;  %v2857_v10 = vor.u32 %v3327_v1, %v2854_v3  ;;  %v3062_v56 = vld [vmem:[#allocation5 + $0x758] sm:$0xf0] }
  0xef   :  { %v3113_v14 = vor.u32 %v3391_v6, %v3110_v7  ;;  %v3347_v48 = vld [vmem:[#allocation5 + $0x64c] sm:$0xf]  ;;  %v2662_v0 = vld [vmem:[#allocation5 + $0x438] sm:$0xf0] }
  0xf0   :  { %1992 = vmatpush.bf16.msra.mxu0 %v2153_v12  ;;  %2005 = vmatpush.bf16.msra.mxu1 %v2281_v15  ;;  %v2710_v12 = vld [vmem:[#allocation5 + $0x498] sm:$0xf0]  ;;  %v3379_v55 = vld [vmem:[#allocation5 + $0x74c] sm:$0xf] }
  0xf1   :  { %2018 = vmatpush.bf16.msra.mxu2 %v2409_v16  ;;  %v2838_v15 = vld [vmem:[#allocation5 + $0x598] sm:$0xf0]  ;;  %v3355_v16 = vld [vmem:[#allocation5 + $0x68c] sm:$0xf]  ;;  %v2713_v18 = vor.u32 %v3291_v9, %v2710_v12  ;;  %v3065_v3 = vor.u32 %v3379_v55, %v3062_v56 }
  0xf2   :  { %2031 = vmatpush.bf16.msra.mxu3 %v2537_v21  ;;  %v3287_v21 = vld [vmem:[#allocation5 + $0x46c] sm:$0xf]  ;;  %v2790_v4 = vld [vmem:[#allocation5 + $0x538] sm:$0xf0] }
  0xf3   :  { %v3279_v63 = vld [vmem:[#allocation5 + $0x42c] sm:$0xf]  ;;  %v2918_v6 = vld [vmem:[#allocation5 + $0x638] sm:$0xf0] }
  0xf4   :  { %1993 = vmatpush.bf16.msra.mxu0 %v2137_v31  ;;  %2006 = vmatpush.bf16.msra.mxu1 %v2265_v37  ;;  %v1787_v19 = vpop.f32.mrf.mxu0  ;;  %v1800_v25 = vpop.f32.mrf.mxu1  ;;  %v2950_v31 = vld [vmem:[#allocation5 + $0x678] sm:$0xf0]  ;;  %v2697_v37 = vor.u32 %v3287_v21, %v2694_v22  ;;  %v3311_v1 = vld [vmem:[#allocation5 + $0x52c] sm:$0xf]  ;;  %v2665_v9 = vor.u32 %v3279_v63, %v2662_v0 }
  0xf5   :  { %2019 = vmatpush.bf16.msra.mxu2 %v2393_v38  ;;  %v1788_v24 = vadd.f32 %v1787_v19, %v359_v13  ;;  %v2825_v38 = vor.u32 %v3319_v23, %v2822_v27  ;;  %v2953_v39 = vor.u32 %v3351_v28, %v2950_v31  ;;  %v3343_v5 = vld [vmem:[#allocation5 + $0x62c] sm:$0xf]  ;;  %v3030_v19 = vld [vmem:[#allocation5 + $0x718] sm:$0xf0] }
  0xf6   :  { %2032 = vmatpush.bf16.msra.mxu3 %v2521_v42  ;;  %v2678_v42 = vld [vmem:[#allocation5 + $0x458] sm:$0xf0]  ;;  %v3375_v7 = vld [vmem:[#allocation5 + $0x72c] sm:$0xf] }
  0xf7   :  { %1994 = vmatmul.bf16.vlgmr.msra.gmra.mxu0 %v3567_v35  ;;  %2007 = vmatmul.bf16.vlgmr.msra.gmra.mxu1 %v3569_v36  ;;  %v2966_v35 = vld [vmem:[#allocation5 + $0x698] sm:$0xf0]  ;;  %v1801_v34 = vadd.f32 %v1800_v25, %v1788_v24  ;;  %v2681_v57 = vor.u32 %v3283_v40, %v2678_v42  ;;  %v3275_v12 = vld [vmem:[#allocation5 + $0x40c] sm:$0xf] }
  0xf8   :  { %2038 = vmatpush.bf16.msrb.mxu0 %v2761_v43  ;;  %2051 = vmatpush.bf16.msrb.mxu1 %v2889_v45  ;;  %v2969_v20 = vor.u32 %v3355_v16, %v2966_v35  ;;  %v3315_v43 = vld [vmem:[#allocation5 + $0x54c] sm:$0xf]  ;;  %v2774_v16 = vld [vmem:[#allocation5 + $0x518] sm:$0xf0] }
  0xf9   :  { %2064 = vmatpush.bf16.msrb.mxu2 %v3017_v46  ;;  %2033 = vmatmul.bf16.vlgmr.msra.gmra.mxu3 %v3565_v30  ;;  %v3094_v30 = vld [vmem:[#allocation5 + $0x798] sm:$0xf0]  ;;  %v3081_v46 = vor.u32 %v3383_v32, %v3078_v33  ;;  %v3307_v13 = vld [vmem:[#allocation5 + $0x50c] sm:$0xf] }
  0xfa   :  { %2077 = vmatpush.bf16.msrb.mxu3 %v3145_v41  ;;  %2020 = vmatmul.bf16.vlgmr.msra.gmra.mxu2 %v3563_v29  ;;  %v3323_v29 = vld [vmem:[#allocation5 + $0x58c] sm:$0xf]  ;;  %v3097_v26 = vor.u32 %v3387_v17, %v3094_v30  ;;  %v2902_v17 = vld [vmem:[#allocation5 + $0x618] sm:$0xf0] }
  0xfb   :  { %v2841_v36 = vor.u32 %v3323_v29, %v2838_v15  ;;  %v2646_v29 = vld [vmem:[#allocation5 + $0x418] sm:$0xf0]  ;;  %v3339_v35 = vld [vmem:[#allocation5 + $0x60c] sm:$0xf] }
  0xfc   :  { %2039 = vmatpush.bf16.msrb.mxu0 %v2745_v59  ;;  %2052 = vmatpush.bf16.msrb.mxu1 %v2873_v60  ;;  %v1826_v53 = vpop.f32.mrf.mxu3  ;;  %v1789_v59 = vpop.f32.mrf.mxu0  ;;  %v2809_v60 = vor.u32 %v3315_v43, %v2806_v47  ;;  %v2905_v21 = vor.u32 %v3339_v35, %v2902_v17  ;;  %v361_v17 = vperm.slane %v3602_v44, 3 }
  0xfd   :  { %2065 = vmatpush.bf16.msrb.mxu2 %v3001_v61  ;;  %v1813_v45 = vpop.f32.mrf.mxu2  ;;  %v2937_v61 = vor.u32 %v3347_v48, %v2934_v49 }
  0xfe   :  { %2078 = vmatpush.bf16.msrb.mxu3 %v3129_v2  ;;  %v1814_v41 = vadd.f32 %v1813_v45, %v1801_v34  ;;  %v1802_v2 = vpop.f32.mrf.mxu1  ;;  %v360_v45 = vperm.slane %v3602_v44, 2 }
 0x100   :  { %2040 = vmatpush.bf16.msrb.mxu0 %v2729_v8  ;;  %2053 = vmatpush.bf16.msrb.mxu1 %v2857_v10  ;;  %v1827_v58 = vadd.f32 %v1826_v53, %v1814_v41  ;;  %v3046_v8 = vld [vmem:[#allocation5 + $0x738] sm:$0xf0]  ;;  %v2793_v10 = vor.u32 %v3311_v1, %v2790_v4 }
 0x101   :  { %2066 = vmatpush.bf16.msrb.mxu2 %v2985_v11  ;;  %v2921_v11 = vor.u32 %v3343_v5, %v2918_v6  ;;  %v3049_v15 = vor.u32 %v3375_v7, %v3046_v8 }
 0x102   :  { %2079 = vmatpush.bf16.msrb.mxu3 %v3113_v14 }
 0x104   :  { %2041 = vmatpush.bf16.msrb.mxu0 %v2713_v18  ;;  %2054 = vmatpush.bf16.msrb.mxu1 %v2841_v36  ;;  %v1828_v30 = vpop.f32.mrf.mxu3  ;;  %v3371_v18 = vld [vmem:[#allocation5 + $0x70c] sm:$0xf]  ;;  %v2649_v36 = vor.u32 %v3275_v12, %v2646_v29 }
 0x105   :  { %2067 = vmatpush.bf16.msrb.mxu2 %v2969_v20  ;;  %v1815_v14 = vpop.f32.mrf.mxu2  ;;  %v2777_v20 = vor.u32 %v3307_v13, %v2774_v16  ;;  %v3033_v22 = vor.u32 %v3371_v18, %v3030_v19 }
 0x106   :  { %2080 = vmatpush.bf16.msrb.mxu3 %v3097_v26 }
 0x108   :  { %2042 = vmatpush.bf16.msrb.mxu0 %v2697_v37  ;;  %2055 = vmatpush.bf16.msrb.mxu1 %v2825_v38  ;;  %v3410_v37 = vpop.eup %3409 }
 0x109   :  { %2068 = vmatpush.bf16.msrb.mxu2 %v2953_v39 }
 0x10a   :  { %2081 = vmatpush.bf16.msrb.mxu3 %v3081_v46 }
 0x10c   :  { %2043 = vmatpush.bf16.msrb.mxu0 %v2681_v57  ;;  %2056 = vmatpush.bf16.msrb.mxu1 %v2809_v60 }
 0x10d   :  { %2069 = vmatpush.bf16.msrb.mxu2 %v2937_v61 }
 0x10e   :  { %2082 = vmatpush.bf16.msrb.mxu3 %v3065_v3 }
 0x110   :  { %2044 = vmatpush.bf16.msrb.mxu0 %v2665_v9  ;;  %2057 = vmatpush.bf16.msrb.mxu1 %v2793_v10 }
 0x111   :  { %2070 = vmatpush.bf16.msrb.mxu2 %v2921_v11 }
 0x112   :  { %2083 = vmatpush.bf16.msrb.mxu3 %v3049_v15 }
 0x114   :  { %2045 = vmatpush.bf16.msrb.mxu0 %v2649_v36  ;;  %2058 = vmatpush.bf16.msrb.mxu1 %v2777_v20  ;;  %v1839_v23 = vpop.f32.mrf.mxu0  ;;  %v1852_v25 = vpop.f32.mrf.mxu1 }
 0x115   :  { %2071 = vmatpush.bf16.msrb.mxu2 %v2905_v21  ;;  %v1840_v24 = vadd.f32 %v1839_v23, %v1827_v58 }
 0x116   :  { %2084 = vmatpush.bf16.msrb.mxu3 %v3033_v22 }
 0x117   :  { %2046 = vmatmul.bf16.vlgmr.msrb.gmra.mxu0 %v3580_v51  ;;  %2059 = vmatmul.bf16.vlgmr.msrb.gmra.mxu1 %v3584_v54  ;;  %v1853_v26 = vadd.f32 %v1852_v25, %v1840_v24  ;;  %v3624_v51 = vld [vmem:[#allocation8] sm:$0xf] }
 0x118   :  { %2072 = vmatmul.bf16.vlgmr.msrb.gmra.mxu2 %v3578_v50  ;;  %v2096_v50 = vperm.slane %v3624_v51, 0  ;;  %v2098_v8 = vperm.slane %v3624_v51, 2  ;;  %v2099_v44 = vperm.slane %v3624_v51, 3 }
 0x119   :  { %2085 = vmatmul.bf16.vlgmr.msrb.gmra.mxu3 %v3582_v52  ;;  %v2097_v52 = vperm.slane %v3624_v51, 1 }
 0x11a   :  { %v2104_v40 = vmul.f32 %v3410_v37, %v2096_v50 }
 0x11c   :  { %v1878_v31 = vpop.f32.mrf.mxu3  ;;  %v1841_v33 = vpop.f32.mrf.mxu0 }
 0x11d   :  { %v1865_v27 = vpop.f32.mrf.mxu2  ;;  %v1854_v34 = vpop.f32.mrf.mxu1 }
 0x11e   :  { %v1866_v28 = vadd.f32 %v1865_v27, %v1853_v26 }
 0x120   :  { %v1879_v32 = vadd.f32 %v1878_v31, %v1866_v28 }
 0x122   :  { %3411 = vtanh.f32 %v1879_v32 }
 0x124   :  { %v1880_v38 = vpop.f32.mrf.mxu3 }
 0x125   :  { %v1867_v54 = vpop.f32.mrf.mxu2 }
 0x128   :  { %v3412_v39 = vpop.eup %3411 }
 0x129   :  { %v2105_v42 = vmul.f32 %v3412_v39, %v2097_v52 }
 0x12b   :  { %v2108_v43 = vadd.f32 %v2105_v42, %v2104_v40 }
 0x134   :  { %v1891_v62 = vpop.f32.mrf.mxu0  ;;  %v1904_v47 = vpop.f32.mrf.mxu1 }
 0x135   :  { %v1892_v46 = vadd.f32 %v1891_v62, %v360_v45 }
 0x137   :  { %v1905_v48 = vadd.f32 %v1904_v47, %v1892_v46 }
 0x13c   :  { %v1930_v53 = vpop.f32.mrf.mxu3  ;;  %v1893_v56 = vpop.f32.mrf.mxu0 }
 0x13d   :  { %v1917_v49 = vpop.f32.mrf.mxu2  ;;  %v1906_v57 = vpop.f32.mrf.mxu1 }
 0x13e   :  { %v1918_v41 = vadd.f32 %v1917_v49, %v1905_v48 }
 0x140   :  { %v1931_v55 = vadd.f32 %v1930_v53, %v1918_v41 }
 0x144   :  { %v1932_v59 = vpop.f32.mrf.mxu3 }
 0x145   :  { %v1919_v58 = vpop.f32.mrf.mxu2 }
 0x154   :  { %v1943_v60 = vpop.f32.mrf.mxu0  ;;  %v1956_v63 = vpop.f32.mrf.mxu1 }
 0x155   :  { %v1944_v61 = vadd.f32 %v1943_v60, %v1931_v55 }
 0x157   :  { %v1957_v0 = vadd.f32 %v1956_v63, %v1944_v61 }
 0x15c   :  { %v1982_v3 = vpop.f32.mrf.mxu3  ;;  %v1945_v5 = vpop.f32.mrf.mxu0 }
 0x15d   :  { %v1969_v1 = vpop.f32.mrf.mxu2  ;;  %v1958_v6 = vpop.f32.mrf.mxu1 }
 0x15e   :  { %v1970_v2 = vadd.f32 %v1969_v1, %v1957_v0 }
 0x160   :  { %v1983_v4 = vadd.f32 %v1982_v3, %v1970_v2 }
 0x162   :  { %3413 = vtanh.f32 %v1983_v4 }
 0x164   :  { %v1984_v9 = vpop.f32.mrf.mxu3 }
 0x165   :  { %v1971_v7 = vpop.f32.mrf.mxu2 }
 0x168   :  { %v3414_v10 = vpop.eup %3413 }
 0x169   :  { %v2106_v11 = vmul.f32 %v3414_v10, %v2098_v8 }
 0x16b   :  { %v2109_v12 = vadd.f32 %v2108_v43, %v2106_v11 }
 0x174   :  { %v1995_v29 = vpop.f32.mrf.mxu0  ;;  %v2008_v13 = vpop.f32.mrf.mxu1 }
 0x175   :  { %v1996_v19 = vadd.f32 %v1995_v29, %v361_v17 }
 0x177   :  { %v2009_v36 = vadd.f32 %v2008_v13, %v1996_v19 }
 0x17c   :  { %v2034_v15 = vpop.f32.mrf.mxu3  ;;  %v1997_v16 = vpop.f32.mrf.mxu0 }
 0x17d   :  { %v2021_v14 = vpop.f32.mrf.mxu2  ;;  %v2010_v35 = vpop.f32.mrf.mxu1 }
 0x17e   :  { %v2022_v20 = vadd.f32 %v2021_v14, %v2009_v36 }
 0x180   :  { %v2035_v21 = vadd.f32 %v2034_v15, %v2022_v20 }
 0x184   :  { %v2036_v18 = vpop.f32.mrf.mxu3 }
 0x185   :  { %v2023_v30 = vpop.f32.mrf.mxu2 }
 0x194   :  { %v2047_v22 = vpop.f32.mrf.mxu0  ;;  %v2060_v23 = vpop.f32.mrf.mxu1 }
 0x195   :  { %v2048_v24 = vadd.f32 %v2047_v22, %v2035_v21 }
 0x197   :  { %v2061_v25 = vadd.f32 %v2060_v23, %v2048_v24 }
 0x19b   :  { %v2073_v26 = vpop.f32.mrf.mxu2 }
 0x19c   :  { %v2074_v27 = vadd.f32 %v2073_v26, %v2061_v25  ;;  %v2086_v28 = vpop.f32.mrf.mxu3  ;;  %v2049_v31 = vpop.f32.mrf.mxu0 }
 0x19d   :  { %v2062_v32 = vpop.f32.mrf.mxu1 }
 0x19e   :  { %v2087_v33 = vadd.f32 %v2086_v28, %v2074_v27 }
 0x1a0   :  { %3415 = vtanh.f32 %v2087_v33 }
 0x1a3   :  { %v2075_v34 = vpop.f32.mrf.mxu2 }
 0x1a4   :  { %v2088_v54 = vpop.f32.mrf.mxu3 }
 0x1a6   :  { %v3416_v50 = vpop.eup %3415 }
 0x1a7   :  { %v2107_v52 = vmul.f32 %v3416_v50, %v2099_v44 }
 0x1a9   :  { %v2110_v37 = vadd.f32 %v2109_v12, %v2107_v52 }
 0x1ab   :  { %2111 = vadd.xlane.f32.xlu0 %v2110_v37 }
 0x21e   :  { %v2112_v38 = vpop.xlane.xlu0 %2111 }
 0x21f   :  { %2114 = vst.msk [vmem:[%s3639_s4] sm:$0xff] %vm2113_vm4, %v2112_v38 }
 0x220   :  { %2119 = vsyncpa [#allocation4], 1 }
 0x221   :  { %2120 = vsyncpa [#allocation6], 1 }
 0x222   :  { %2121 = vsyncpa [#allocation9], 1 }

</bundles_post_ra>
